<compile_context>
chip_gen: v6e
topology: v6e:2x2x1
jax: 0.10.0
libtpu: 0.0.40
codegen_flags: <defaults>
</compile_context>

<pallas_src>
import functools
import math

import jax
import jax.numpy as jnp
from jax import lax
from jax.experimental import pallas as pl
from jax.experimental.pallas import tpu as pltpu

F32_EPS = float(jnp.finfo(jnp.float32).eps)          # torch LayerNorm override: finfo(dtype).eps
MASK_VALUE = -0.7 * float(jnp.finfo(jnp.float32).max)

# Weights + inter-kernel activation stream dtype (MXU operands).  Set to jnp.float32 to
# recover full-f32 matmuls (at 2x the HBM traffic).
COMPUTE_DTYPE = jnp.bfloat16


# ------------------------------ shape / tile helpers -------------------------------

def _round_up(x, m):
    return (x + m - 1) // m * m


def _pick_m_tile(M):
    """M (row) tile: full-extent for small M, otherwise pad to a 128/256 multiple.

    (Fixes the previous divisor heuristic that could pick e.g. tm=88 for M=616.)"""
    if M <= 256:
        return M, M                       # full-extent block is always legal
    if M % 256 == 0:
        return 256, M
    return 128, _round_up(M, 128)


def _pick_n_tile(N):
    Np = _round_up(N, 128)                # keep output stores lane-dense
    if Np <= 256:
        return Np, Np
    if Np % 256 == 0:
        return 256, Np
    return 128, Np


def _pick_k_tile(K, max_tk=512):
    Kp = _round_up(K, 128)
    if Kp <= max_tk:
        return Kp, Kp
    for t in (512, 384, 256, 128):
        if t <= max_tk and Kp % t == 0:
            return t, Kp
    return 128, Kp


def _pad2d(a, rows, cols):
    r, c = a.shape
    if r == rows and c == cols:
        return a
    return jnp.pad(a, ((0, rows - r), (0, cols - c)))


def _vmem_limit(*tile_bytes):
    # double-buffered tiles + accumulator/output with 2x slack; right-sized (not a blanket
    # 48 MiB) so it stays well under the 64 MiB v7x VMEM ceiling; harmless on v5e/v6e.
    need = 4 * sum(tile_bytes)
    return int(min(max(need, 8 * 2 ** 20), 32 * 2 ** 20))


def _attn_group(BH):
    """batch*head slabs per attention grid step: ~8 to amortize per-step overhead, while
    keeping >=2 grid steps whenever possible so v7x can shard across both TensorCores."""
    if BH <= 2:
        return 1
    g = min(8, BH // 2)
    while BH % g:
        g -= 1
    return g


# ----------------------- exact (erf) GELU for the c_fc epilogue ----------------------

def _erf(x):
    # Abramowitz & Stegun 7.1.26 rational approximation (|err| <= 1.5e-7).  Only mul/add
    # and one exp, so it rides the free VPU/EUP slots of the MXU-bound matmul epilogue.
    p = 0.3275911
    a1, a2, a3, a4, a5 = 0.254829592, -0.284496736, 1.421413741, -1.453152027, 1.061405429
    sign = jnp.where(x >= 0.0, 1.0, -1.0)
    ax = jnp.abs(x)
    t = 1.0 / (1.0 + p * ax)
    poly = ((((a5 * t + a4) * t + a3) * t + a2) * t + a1) * t
    return sign * (1.0 - poly * jnp.exp(-ax * ax))


def _gelu_exact(x):
    # nn.GELU() default = exact erf GELU.
    return 0.5 * x * (1.0 + _erf(x * 0.7071067811865476))


# --------------------- tiled linear (MXU) with fused LN / epilogues ------------------

def _linear_kernel(*refs, activation, fuse_ln, has_res):
    x_ref, w_ref, b_ref = refs[:3]
    i = 3
    if fuse_ln:
        lnw_ref, lnb_ref = refs[i], refs[i + 1]
        i += 2
    if has_res:
        res_ref = refs[i]
        i += 1
    o_ref, acc_ref = refs[i], refs[i + 1]
    k = pl.program_id(2)

    @pl.when(k == 0)
    def _():
        acc_ref[...] = jnp.zeros_like(acc_ref)

    x = x_ref[...]
    if fuse_ln:
        # LayerNorm prologue (only valid when the full K row is in this single block).
        xf = x.astype(jnp.float32)
        mu = jnp.mean(xf, axis=-1, keepdims=True)
        var = jnp.mean(jnp.square(xf - mu), axis=-1, keepdims=True)
        xf = (xf - mu) * lax.rsqrt(var + F32_EPS)
        x = (xf * lnw_ref[...] + lnb_ref[...]).astype(w_ref.dtype)
    elif x.dtype != w_ref.dtype:
        x = x.astype(w_ref.dtype)          # no-op on the bf16 activation stream
    acc_ref[...] += jnp.dot(x, w_ref[...], preferred_element_type=jnp.float32)

    @pl.when(k == pl.num_programs(2) - 1)
    def _():
        y = acc_ref[...] + b_ref[...].astype(jnp.float32)
        if activation is not None:
            y = activation(y)                                   # fused GELU epilogue
        if has_res:
            y = y + res_ref[...].astype(jnp.float32)            # fused residual add
        o_ref[...] = y.astype(o_ref.dtype)


def linear(x, w, b=None, *, ln=None, residual=None, activation=None, out_dtype=None):
    """o = activation(LN?(x) @ w + b) [+ residual], tiled (M, N, K) with K innermost."""
    M, K = x.shape
    Kw, N = w.shape
    assert K == Kw
    out_dtype = out_dtype if out_dtype is not None else x.dtype

    tm, Mp = _pick_m_tile(M)
    tn, Np = _pick_n_tile(N)
    tk, Kp = _pick_k_tile(K)

    fuse_ln = ln is not None and Kp == K and tk == Kp
    if ln is not None and not fuse_ln:
        # Fallback (K padded / multi-block): standalone LayerNorm kernel first.
        x = layernorm(x, ln[0], ln[1], out_dtype=w.dtype)

    xp = _pad2d(x, Mp, Kp)
    wp = _pad2d(w, Kp, Np)
    bp = _pad2d(b, 1, Np) if b is not None else jnp.zeros((1, Np), jnp.float32)

    w_spec = pl.BlockSpec((tk, tn), lambda i, j, k: (k, j))
    if Kp // tk >= 3:
        # v5e (lowest HBM BW): 3-deep weight-stream buffering hides inter-k-step DMA latency.
        w_spec = pl.BlockSpec((tk, tn), lambda i, j, k: (k, j),
                              pipeline_mode=pl.Buffered(3))

    in_specs = [pl.BlockSpec((tm, tk), lambda i, j, k: (i, k)),
                w_spec,
                pl.BlockSpec((1, tn), lambda i, j, k: (0, j))]
    args = [xp, wp, bp]
    if fuse_ln:
        in_specs += [pl.BlockSpec((1, tk), lambda i, j, k: (0, 0)),
                     pl.BlockSpec((1, tk), lambda i, j, k: (0, 0))]
        args += [ln[0], ln[1]]
    if residual is not None:
        in_specs.append(pl.BlockSpec((tm, tn), lambda i, j, k: (i, j)))
        args.append(_pad2d(residual, Mp, Np))

    vmem_limit = _vmem_limit(
        tm * tk * xp.dtype.itemsize,
        tk * tn * wp.dtype.itemsize,
        tm * tn * 4,                                        # f32 accumulator scratch
        tm * tn * jnp.dtype(out_dtype).itemsize,
        (tm * tn * args[-1].dtype.itemsize) if residual is not None else 0)

    out = pl.pallas_call(
        functools.partial(_linear_kernel, activation=activation,
                          fuse_ln=fuse_ln, has_res=residual is not None),
        out_shape=jax.ShapeDtypeStruct((Mp, Np), out_dtype),
        grid=(Mp // tm, Np // tn, Kp // tk),
        in_specs=in_specs,
        out_specs=pl.BlockSpec((tm, tn), lambda i, j, k: (i, j)),
        scratch_shapes=[pltpu.VMEM((tm, tn), jnp.float32)],
        compiler_params=pltpu.CompilerParams(
            dimension_semantics=("parallel", "parallel", "arbitrary"),
            vmem_limit_bytes=vmem_limit),
    )(*args)
    if (Mp, Np) != (M, N):
        out = out[:M, :N]
    return out


# ----------------------- standalone LayerNorm (fallback only) ------------------------

def _layernorm_kernel(x_ref, w_ref, b_ref, o_ref):
    x = x_ref[...].astype(jnp.float32)
    mu = jnp.mean(x, axis=-1, keepdims=True)
    var = jnp.mean(jnp.square(x - mu), axis=-1, keepdims=True)
    y = (x - mu) * lax.rsqrt(var + F32_EPS)       # eps = finfo(f32).eps, like the module
    o_ref[...] = (y * w_ref[...] + b_ref[...]).astype(o_ref.dtype)


def layernorm(x, w, b, out_dtype=None):
    out_dtype = out_dtype if out_dtype is not None else x.dtype
    M, D = x.shape
    tm, Mp = _pick_m_tile(M)
    xp = x if Mp == M else jnp.pad(x, ((0, Mp - M), (0, 0)))
    out = pl.pallas_call(
        _layernorm_kernel,
        out_shape=jax.ShapeDtypeStruct((Mp, D), out_dtype),
        grid=(Mp // tm,),
        in_specs=[pl.BlockSpec((tm, D), lambda i: (i, 0)),
                  pl.BlockSpec((1, D), lambda i: (0, 0)),
                  pl.BlockSpec((1, D), lambda i: (0, 0))],
        out_specs=pl.BlockSpec((tm, D), lambda i: (i, 0)),
        compiler_params=pltpu.CompilerParams(
            dimension_semantics=("parallel",),
            vmem_limit_bytes=_vmem_limit(2 * tm * D * 4)),
    )(xp, w, b)
    return out if Mp == M else out[:M]


# ------------------------ multi-head causal attention (head-major) -------------------

def _attention_kernel(qkv_ref, o_ref, *, scale, seq_len, causal):
    # qkv_ref: [3, G, Lp, dh] — G (batch*head) slabs, head-major, lane dim = dh.
    _, _, Lp, _ = qkv_ref.shape
    q = qkv_ref[0]
    k = qkv_ref[1]
    v = qkv_ref[2]
    s = jnp.einsum('gqd,gkd->gqk', q, k,
                   preferred_element_type=jnp.float32) * scale          # [G, Lp, Lp]
    row = lax.broadcasted_iota(jnp.int32, (Lp, Lp), 0)
    col = lax.broadcasted_iota(jnp.int32, (Lp, Lp), 1)
    invalid = col >= seq_len                                            # padded key columns
    if causal:
        invalid = invalid | (col > row)                                 # strict upper triangle
    s = jnp.where(invalid[None], MASK_VALUE, s)
    s = s - jnp.max(s, axis=-1, keepdims=True)
    p = jnp.exp(s)
    p = p * pl.reciprocal(jnp.sum(p, axis=-1, keepdims=True), approx=True)
    o = jnp.einsum('gqk,gkd->gqd', p.astype(v.dtype), v,
                   preferred_element_type=jnp.float32)                  # [G, Lp, dh]
    o_ref[...] = o.astype(o_ref.dtype)


def attention(qkv_flat, *, B, L, W, heads, causal=True):
    # TODO(synk): for long sequences switch to an online-softmax flash pattern with a KV
    # grid axis; CLIP text context (<=77) fits comfortably per (batch,head) slab in VMEM.
    dh = W // heads
    BH = B * heads
    Lp = _round_up(L, 8)
    # Head-major restructure done wrapper-side (one XLA transpose) so every in-kernel
    # load/store is contiguous per (batch, head) slab — no per-head lane slicing / concat.
    qkv = qkv_flat.reshape(B, L, 3, heads, dh)
    if Lp != L:
        qkv = jnp.pad(qkv, ((0, 0), (0, Lp - L), (0, 0), (0, 0), (0, 0)))
    qkv = jnp.transpose(qkv, (2, 0, 3, 1, 4)).reshape(3, BH, Lp, dh)    # [3, B*H, Lp, dh]

    G = _attn_group(BH)
    vmem_limit = _vmem_limit(3 * G * Lp * dh * qkv.dtype.itemsize,
                             G * Lp * dh * qkv.dtype.itemsize,
                             G * Lp * Lp * 4)
    out = pl.pallas_call(
        functools.partial(_attention_kernel, scale=1.0 / math.sqrt(dh),
                          seq_len=L, causal=causal),
        out_shape=jax.ShapeDtypeStruct((BH, Lp, dh), qkv_flat.dtype),
        grid=(BH // G,),
        in_specs=[pl.BlockSpec((3, G, Lp, dh), lambda s: (0, s, 0, 0))],
        out_specs=pl.BlockSpec((G, Lp, dh), lambda s: (s, 0, 0)),
        compiler_params=pltpu.CompilerParams(
            dimension_semantics=("parallel",),
            vmem_limit_bytes=vmem_limit),
    )(qkv)
    out = out.reshape(B, heads, Lp, dh)[:, :, :L]                       # drop L padding
    return jnp.transpose(out, (0, 2, 1, 3)).reshape(B * L, W)           # back to [B*L, W]


# ----------------------------------- model forward -----------------------------------

def resblock(xflat, p, *, B, L, W, heads):
    # x = x + out_proj(MHA(ln_1(x), causal_mask)); ln_1 fused as the qkv matmul prologue.
    qkv = linear(xflat, p['in_proj_w'], p['in_proj_b'], ln=(p['ln1_w'], p['ln1_b']))
    attn = attention(qkv, B=B, L=L, W=W, heads=heads, causal=True)
    xflat = linear(attn, p['out_proj_w'], p['out_proj_b'], residual=xflat)
    # x = x + c_proj(gelu(c_fc(ln_2(x)))); ln_2 fused as prologue, exact GELU as epilogue.
    h = linear(xflat, p['c_fc_w'], p['c_fc_b'], ln=(p['ln2_w'], p['ln2_b']),
               activation=_gelu_exact)
    xflat = linear(h, p['c_proj_w'], p['c_proj_b'], residual=xflat)
    return xflat


def text_transformer_forward(text, params, *, heads):
    B, L = text.shape
    W = params['token_embedding'].shape[1]

    # TODO(synk): the token-embedding gather stays in plain JAX (one-shot data-dependent lookup).
    x = jnp.take(params['token_embedding'], text, axis=0)               # [B, L, W] f32
    x = x + params['positional_embedding'][:L][None, :, :]
    xflat = x.reshape(B * L, W).astype(COMPUTE_DTYPE)   # [B,L,W]<->[L,B,W] permutes: layout-only

    for blk in params['blocks']:
        xflat = resblock(xflat, blk, B=B, L=L, W=W, heads=heads)

    # pooled = ln_final(x)[arange(B), text.argmax(-1)] @ text_projection.
    # LayerNorm is row-wise, so gathering the B EOT rows first is exact and avoids
    # normalizing/projecting all B*L positions; this tiny GEMM stays in plain JAX.
    x = xflat.reshape(B, L, W)
    eot = jnp.argmax(text, axis=-1)
    pooled = x[jnp.arange(B), eot].astype(jnp.float32)                  # [B, W]
    mu = jnp.mean(pooled, axis=-1, keepdims=True)
    var = jnp.mean(jnp.square(pooled - mu), axis=-1, keepdims=True)
    pooled = (pooled - mu) * lax.rsqrt(var + F32_EPS)
    pooled = pooled * params['ln_final_w'] + params['ln_final_b']
    return pooled @ params['text_projection']                           # [B, output_dim] f32


# ------------------------------------ parameters --------------------------------------

def init_params(key, *, context_length, vocab_size, width, heads, layers,
                output_dim, mlp_ratio=4.0):
    mlp_width = int(width * mlp_ratio)

    def nrm(k, shape, s=0.02):
        return (s * jax.random.normal(k, shape)).astype(jnp.float32)

    def mxu(k, shape, s=0.02):
        return nrm(k, shape, s).astype(COMPUTE_DTYPE)    # weights cast to bf16 ONCE, at init

    keys = jax.random.split(key, 3 + layers)
    params = {
        'token_embedding': nrm(keys[0], (vocab_size, width)),
        'positional_embedding': nrm(keys[1], (context_length, width), 0.01),
        'text_projection': nrm(keys[2], (width, output_dim), width ** -0.5),
        'ln_final_w': jnp.ones((1, width), jnp.float32),
        'ln_final_b': jnp.zeros((1, width), jnp.float32),
        'blocks': [],
    }
    for l in range(layers):
        bk = jax.random.split(keys[3 + l], 8)
        params['blocks'].append({
            'ln1_w': jnp.ones((1, width), jnp.float32),
            'ln1_b': jnp.zeros((1, width), jnp.float32),
            'in_proj_w': mxu(bk[0], (width, 3 * width)),   # = torch in_proj_weight.T
            'in_proj_b': nrm(bk[1], (1, 3 * width)),
            'out_proj_w': mxu(bk[2], (width, width)),
            'out_proj_b': nrm(bk[3], (1, width)),
            'ln2_w': jnp.ones((1, width), jnp.float32),
            'ln2_b': jnp.zeros((1, width), jnp.float32),
            'c_fc_w': mxu(bk[4], (width, mlp_width)),
            'c_fc_b': nrm(bk[5], (1, mlp_width)),
            'c_proj_w': mxu(bk[6], (mlp_width, width)),
            'c_proj_b': nrm(bk[7], (1, width)),
        })
    return params


# --------------------------------------- main ------------------------------------------

if __name__ == "__main__":
    B = 2
    context_length = 16          # small demo (module default is 77)
    vocab_size = 512
    width, heads, layers = 128, 4, 2   # 128-lane-aligned demo width, dh = 32
    output_dim = 128

    key = jax.random.PRNGKey(0)
    kt, kp = jax.random.split(key)
    text = jax.random.randint(kt, (B, context_length), 0, vocab_size, dtype=jnp.int32)
    params = init_params(kp, context_length=context_length, vocab_size=vocab_size,
                         width=width, heads=heads, layers=layers, output_dim=output_dim)

    fwd = jax.jit(functools.partial(text_transformer_forward, heads=heads))
    out = jax.block_until_ready(fwd(text, params))
    assert out.shape == (B, output_dim) and out.dtype == jnp.float32
    print("KERNEL_OK")
</pallas_src>

<mosaic_0001>
module attributes {stable_mosaic.version = 11 : i64} {
  func.func @_linear_kernel(%arg0: i32, %arg1: i32, %arg2: i32, %arg3: memref<32x128xbf16, #tpu.memory_space<vmem>>, %arg4: memref<128x128xbf16, #tpu.memory_space<vmem>>, %arg5: memref<1x128xf32, #tpu.memory_space<vmem>>, %arg6: memref<1x128xf32, #tpu.memory_space<vmem>>, %arg7: memref<1x128xf32, #tpu.memory_space<vmem>>, %arg8: memref<32x128xbf16, #tpu.memory_space<vmem>>, %arg9: memref<32x128xf32, #tpu.memory_space<vmem>>) attributes {dimension_semantics = [#tpu.dimension_semantics<parallel>, #tpu.dimension_semantics<parallel>, #tpu.dimension_semantics<arbitrary>], iteration_bounds = array<i64: 1, 3, 1>, scalar_prefetch = 0 : i64, scratch_operands = 1 : i64, tpu.core_type = #tpu.core_type<tc>, window_params = [{transform_indices = @transform_0, window_bounds = array<i64: 32, 128>}, {transform_indices = @transform_1, window_bounds = array<i64: 128, 128>}, {transform_indices = @transform_2, window_bounds = array<i64: 1, 128>}, {pipeline_mode = #tpu.pipeline_mode<synchronous>, transform_indices = @transform_3, window_bounds = array<i64: 1, 128>}, {pipeline_mode = #tpu.pipeline_mode<synchronous>, transform_indices = @transform_4, window_bounds = array<i64: 1, 128>}, {transform_indices = @transform_5, window_bounds = array<i64: 32, 128>}]} {
    %c0_i32 = arith.constant 0 : i32
    %0 = arith.cmpi eq, %arg2, %c0_i32 : i32
    %1 = arith.extui %0 : i1 to i32
    %c0_i32_0 = arith.constant 0 : i32
    %2 = arith.cmpi ne, %1, %c0_i32_0 : i32
    scf.if %2 {
      %cst_19 = arith.constant 0.000000e+00 : f32
      %38 = vector.broadcast %cst_19 : f32 to vector<32x128xf32>
      %c0_20 = arith.constant 0 : index
      %c0_21 = arith.constant 0 : index
      %39 = vector.load %arg9[%c0_20, %c0_21] : memref<32x128xf32, #tpu.memory_space<vmem>>, vector<32x128xf32>
      tpu.vector_store %arg9[%c0_20, %c0_21], %38 {strides = array<i32>} : memref<32x128xf32, #tpu.memory_space<vmem>>, vector<32x128xf32>,
    } else {
    }
    %c0 = arith.constant 0 : index
    %c0_1 = arith.constant 0 : index
    %3 = vector.load %arg3[%c0, %c0_1] : memref<32x128xbf16, #tpu.memory_space<vmem>>, vector<32x128xbf16>
    %4 = arith.extf %3 : vector<32x128xbf16> to vector<32x128xf32>
    %cst = arith.constant dense<0.000000e+00> : vector<32xf32>
    %5 = vector.multi_reduction <add>, %4, %cst [1] : vector<32x128xf32> to vector<32xf32>
    %6 = vector.shape_cast %5 : vector<32xf32> to vector<32x1xf32>
    %cst_2 = arith.constant 1.280000e+02 : f32
    %7 = vector.broadcast %cst_2 : f32 to vector<32x1xf32>
    %8 = arith.divf %6, %7 : vector<32x1xf32>
    %9 = vector.broadcast %8 : vector<32x1xf32> to vector<32x128xf32>
    %10 = arith.subf %4, %9 : vector<32x128xf32>
    %11 = arith.mulf %10, %10 : vector<32x128xf32>
    %cst_3 = arith.constant dense<0.000000e+00> : vector<32xf32>
    %12 = vector.multi_reduction <add>, %11, %cst_3 [1] : vector<32x128xf32> to vector<32xf32>
    %13 = vector.shape_cast %12 : vector<32xf32> to vector<32x1xf32>
    %cst_4 = arith.constant 1.280000e+02 : f32
    %14 = vector.broadcast %cst_4 : f32 to vector<32x1xf32>
    %15 = arith.divf %13, %14 : vector<32x1xf32>
    %16 = vector.broadcast %8 : vector<32x1xf32> to vector<32x128xf32>
    %17 = arith.subf %4, %16 : vector<32x128xf32>
    %cst_5 = arith.constant 1.1920929E-7 : f32
    %18 = vector.broadcast %cst_5 : f32 to vector<32x1xf32>
    %19 = arith.addf %15, %18 : vector<32x1xf32>
    %20 = math.rsqrt %19 : vector<32x1xf32>
    %21 = vector.broadcast %20 : vector<32x1xf32> to vector<32x128xf32>
    %22 = arith.mulf %17, %21 : vector<32x128xf32>
    %c0_6 = arith.constant 0 : index
    %c0_7 = arith.constant 0 : index
    %23 = vector.load %arg6[%c0_6, %c0_7] : memref<1x128xf32, #tpu.memory_space<vmem>>, vector<1x128xf32>
    %24 = vector.broadcast %23 : vector<1x128xf32> to vector<32x128xf32>
    %25 = arith.mulf %22, %24 : vector<32x128xf32>
    %c0_8 = arith.constant 0 : index
    %c0_9 = arith.constant 0 : index
    %26 = vector.load %arg7[%c0_8, %c0_9] : memref<1x128xf32, #tpu.memory_space<vmem>>, vector<1x128xf32>
    %27 = vector.broadcast %26 : vector<1x128xf32> to vector<32x128xf32>
    %28 = arith.addf %25, %27 : vector<32x128xf32>
    %29 = arith.truncf %28 : vector<32x128xf32> to vector<32x128xbf16>
    %c0_10 = arith.constant 0 : index
    %c0_11 = arith.constant 0 : index
    %30 = vector.load %arg9[%c0_10, %c0_11] : memref<32x128xf32, #tpu.memory_space<vmem>>, vector<32x128xf32>
    %c0_12 = arith.constant 0 : index
    %c0_13 = arith.constant 0 : index
    %31 = vector.load %arg4[%c0_12, %c0_13] : memref<128x128xbf16, #tpu.memory_space<vmem>>, vector<128x128xbf16>
    %cst_14 = arith.constant dense<0.000000e+00> : vector<32x128xf32>
    %32 = tpu.matmul %29, %31, %cst_14 {dimension_numbers = #tpu.dot_dimension_numbers<[1], [0], [0], [1], [0, 0, 1, 1], [], []>} : vector<32x128xbf16>, vector<128x128xbf16>, vector<32x128xf32> -> vector<32x128xf32>
    %33 = arith.addf %30, %32 : vector<32x128xf32>
    %c0_15 = arith.constant 0 : index
    %c0_16 = arith.constant 0 : index
    %34 = vector.load %arg9[%c0_15, %c0_16] : memref<32x128xf32, #tpu.memory_space<vmem>>, vector<32x128xf32>
    tpu.vector_store %arg9[%c0_15, %c0_16], %33 {strides = array<i32>} : memref<32x128xf32, #tpu.memory_space<vmem>>, vector<32x128xf32>,
    %c0_i32_17 = arith.constant 0 : i32
    %35 = arith.cmpi eq, %arg2, %c0_i32_17 : i32
    %36 = arith.extui %35 : i1 to i32
    %c0_i32_18 = arith.constant 0 : i32
    %37 = arith.cmpi ne, %36, %c0_i32_18 : i32
    scf.if %37 {
      %c0_19 = arith.constant 0 : index
      %c0_20 = arith.constant 0 : index
      %38 = vector.load %arg9[%c0_19, %c0_20] : memref<32x128xf32, #tpu.memory_space<vmem>>, vector<32x128xf32>
      %c0_21 = arith.constant 0 : index
      %c0_22 = arith.constant 0 : index
      %39 = vector.load %arg5[%c0_21, %c0_22] : memref<1x128xf32, #tpu.memory_space<vmem>>, vector<1x128xf32>
      %40 = vector.broadcast %39 : vector<1x128xf32> to vector<32x128xf32>
      %41 = arith.addf %38, %40 : vector<32x128xf32>
      %42 = arith.truncf %41 : vector<32x128xf32> to vector<32x128xbf16>
      %c0_23 = arith.constant 0 : index
      %c0_24 = arith.constant 0 : index
      %43 = vector.load %arg8[%c0_23, %c0_24] : memref<32x128xbf16, #tpu.memory_space<vmem>>, vector<32x128xbf16>
      tpu.vector_store %arg8[%c0_23, %c0_24], %42 {strides = array<i32>} : memref<32x128xbf16, #tpu.memory_space<vmem>>, vector<32x128xbf16>,
    } else {
    }
    return
  }
  func.func @transform_0(%arg0: i32, %arg1: i32, %arg2: i32) -> (i32, i32) {
    %c0_i32 = arith.constant 0 : i32
    return %arg0, %arg2 : i32, i32
  }
  func.func @transform_1(%arg0: i32, %arg1: i32, %arg2: i32) -> (i32, i32) {
    %c0_i32 = arith.constant 0 : i32
    return %arg2, %arg1 : i32, i32
  }
  func.func @transform_2(%arg0: i32, %arg1: i32, %arg2: i32) -> (i32, i32) {
    %c0_i32 = arith.constant 0 : i32
    %c0_i32_0 = arith.constant 0 : i32
    return %c0_i32, %arg1 : i32, i32
  }
  func.func @transform_3(%arg0: i32, %arg1: i32, %arg2: i32) -> (i32, i32) {
    %c0_i32 = arith.constant 0 : i32
    %c0_i32_0 = arith.constant 0 : i32
    %c0_i32_1 = arith.constant 0 : i32
    return %c0_i32, %c0_i32_0 : i32, i32
  }
  func.func @transform_4(%arg0: i32, %arg1: i32, %arg2: i32) -> (i32, i32) {
    %c0_i32 = arith.constant 0 : i32
    %c0_i32_0 = arith.constant 0 : i32
    %c0_i32_1 = arith.constant 0 : i32
    return %c0_i32, %c0_i32_0 : i32, i32
  }
  func.func @transform_5(%arg0: i32, %arg1: i32, %arg2: i32) -> (i32, i32) {
    %c0_i32 = arith.constant 0 : i32
    return %arg0, %arg1 : i32, i32
  }
}

module attributes {stable_mosaic.version = 11 : i64} {
  func.func @_attention_kernel(%arg0: i32, %arg1: memref<3x4x16x32xbf16, #tpu.memory_space<vmem>>, %arg2: memref<4x16x32xbf16, #tpu.memory_space<vmem>>) attributes {dimension_semantics = [#tpu.dimension_semantics<parallel>], iteration_bounds = array<i64: 2>, scalar_prefetch = 0 : i64, scratch_operands = 0 : i64, tpu.core_type = #tpu.core_type<tc>, window_params = [{transform_indices = @transform_0, window_bounds = array<i64: 3, 4, 16, 32>}, {transform_indices = @transform_1, window_bounds = array<i64: 4, 16, 32>}]} {
    %c0 = arith.constant 0 : index
    %c0_0 = arith.constant 0 : index
    %c0_1 = arith.constant 0 : index
    %c0_2 = arith.constant 0 : index
    %0 = vector.load %arg1[%c0, %c0_0, %c0_1, %c0_2] : memref<3x4x16x32xbf16, #tpu.memory_space<vmem>>, vector<1x4x16x32xbf16>
    %1 = vector.shape_cast %0 : vector<1x4x16x32xbf16> to vector<4x16x32xbf16>
    %c1 = arith.constant 1 : index
    %c0_3 = arith.constant 0 : index
    %c0_4 = arith.constant 0 : index
    %c0_5 = arith.constant 0 : index
    %2 = vector.load %arg1[%c1, %c0_3, %c0_4, %c0_5] : memref<3x4x16x32xbf16, #tpu.memory_space<vmem>>, vector<1x4x16x32xbf16>
    %3 = vector.shape_cast %2 : vector<1x4x16x32xbf16> to vector<4x16x32xbf16>
    %c2 = arith.constant 2 : index
    %c0_6 = arith.constant 0 : index
    %c0_7 = arith.constant 0 : index
    %c0_8 = arith.constant 0 : index
    %4 = vector.load %arg1[%c2, %c0_6, %c0_7, %c0_8] : memref<3x4x16x32xbf16, #tpu.memory_space<vmem>>, vector<1x4x16x32xbf16>
    %5 = vector.shape_cast %4 : vector<1x4x16x32xbf16> to vector<4x16x32xbf16>
    "tpu.trace_start"() <{level = 10 : i32, message = "gqd,gkd->gqk"}> : () -> ()
    %cst = arith.constant dense<0.000000e+00> : vector<4x16x16xf32>
    %6 = tpu.matmul %1, %3, %cst {dimension_numbers = #tpu.dot_dimension_numbers<[2], [2], [1], [1], [0, 0, 0, 1, 1, 1], [0], [0]>} : vector<4x16x32xbf16>, vector<4x16x32xbf16>, vector<4x16x16xf32> -> vector<4x16x16xf32>
    "tpu.trace_stop"() : () -> ()
    %cst_9 = arith.constant 0.176776692 : f32
    %7 = vector.broadcast %cst_9 : f32 to vector<4x16x16xf32>
    %8 = arith.mulf %6, %7 : vector<4x16x16xf32>
    %9 = tpu.iota {dimensions = array<i32: 0>} : vector<16x16xi32>
    %10 = tpu.iota {dimensions = array<i32: 1>} : vector<16x16xi32>
    %c16_i32 = arith.constant 16 : i32
    %11 = vector.broadcast %c16_i32 : i32 to vector<16x16xi32>
    %12 = arith.cmpi sge, %10, %11 : vector<16x16xi32>
    %13 = arith.cmpi sgt, %10, %9 : vector<16x16xi32>
    %14 = arith.ori %12, %13 : vector<16x16xi1>
    %15 = vector.shape_cast %14 : vector<16x16xi1> to vector<1x16x16xi1>
    %cst_10 = arith.constant -2.38197633E+38 : f32
    %16 = vector.shape_cast %15 : vector<1x16x16xi1> to vector<1x16x16xi1>
    %17 = vector.broadcast %16 : vector<1x16x16xi1> to vector<4x16x16xi1>
    %18 = vector.broadcast %cst_10 : f32 to vector<4x16x16xf32>
    %19 = arith.select %17, %18, %8 : vector<4x16x16xi1>, vector<4x16x16xf32>
    %cst_11 = arith.constant dense<0xFF800000> : vector<4x16xf32>
    %20 = vector.multi_reduction <maximumf>, %19, %cst_11 [2] : vector<4x16x16xf32> to vector<4x16xf32>
    %21 = vector.shape_cast %20 : vector<4x16xf32> to vector<4x16x1xf32>
    %22 = vector.broadcast %21 : vector<4x16x1xf32> to vector<4x16x16xf32>
    %23 = arith.subf %19, %22 : vector<4x16x16xf32>
    %24 = math.exp %23 : vector<4x16x16xf32>
    %cst_12 = arith.constant dense<0.000000e+00> : vector<4x16xf32>
    %25 = vector.multi_reduction <add>, %24, %cst_12 [2] : vector<4x16x16xf32> to vector<4x16xf32>
    %26 = vector.shape_cast %25 : vector<4x16xf32> to vector<4x16x1xf32>
    %27 = tpu.reciprocal %26 {approx = true} : vector<4x16x1xf32> -> vector<4x16x1xf32>
    %28 = vector.broadcast %27 : vector<4x16x1xf32> to vector<4x16x16xf32>
    %29 = arith.mulf %24, %28 : vector<4x16x16xf32>
    %30 = arith.truncf %29 : vector<4x16x16xf32> to vector<4x16x16xbf16>
    "tpu.trace_start"() <{level = 10 : i32, message = "gqk,gkd->gqd"}> : () -> ()
    %cst_13 = arith.constant dense<0.000000e+00> : vector<4x16x32xf32>
    %31 = tpu.matmul %30, %5, %cst_13 {dimension_numbers = #tpu.dot_dimension_numbers<[2], [1], [1], [2], [0, 0, 0, 1, 1, 2], [0], [0]>} : vector<4x16x16xbf16>, vector<4x16x32xbf16>, vector<4x16x32xf32> -> vector<4x16x32xf32>
    "tpu.trace_stop"() : () -> ()
    %32 = arith.truncf %31 : vector<4x16x32xf32> to vector<4x16x32xbf16>
    %c0_14 = arith.constant 0 : index
    %c0_15 = arith.constant 0 : index
    %c0_16 = arith.constant 0 : index
    %33 = vector.load %arg2[%c0_14, %c0_15, %c0_16] : memref<4x16x32xbf16, #tpu.memory_space<vmem>>, vector<4x16x32xbf16>
    tpu.vector_store %arg2[%c0_14, %c0_15, %c0_16], %32 {strides = array<i32>} : memref<4x16x32xbf16, #tpu.memory_space<vmem>>, vector<4x16x32xbf16>,
    return
  }
  func.func @transform_0(%arg0: i32) -> (i32, i32, i32, i32) {
    %c0_i32 = arith.constant 0 : i32
    %c0_i32_0 = arith.constant 0 : i32
    %c0_i32_1 = arith.constant 0 : i32
    %c0_i32_2 = arith.constant 0 : i32
    return %c0_i32, %arg0, %c0_i32_0, %c0_i32_1 : i32, i32, i32, i32
  }
  func.func @transform_1(%arg0: i32) -> (i32, i32, i32) {
    %c0_i32 = arith.constant 0 : i32
    %c0_i32_0 = arith.constant 0 : i32
    %c0_i32_1 = arith.constant 0 : i32
    return %arg0, %c0_i32, %c0_i32_0 : i32, i32, i32
  }
}

module attributes {stable_mosaic.version = 11 : i64} {
  func.func @_linear_kernel(%arg0: i32, %arg1: i32, %arg2: i32, %arg3: memref<32x128xbf16, #tpu.memory_space<vmem>>, %arg4: memref<128x128xbf16, #tpu.memory_space<vmem>>, %arg5: memref<1x128xf32, #tpu.memory_space<vmem>>, %arg6: memref<32x128xbf16, #tpu.memory_space<vmem>>, %arg7: memref<32x128xbf16, #tpu.memory_space<vmem>>, %arg8: memref<32x128xf32, #tpu.memory_space<vmem>>) attributes {dimension_semantics = [#tpu.dimension_semantics<parallel>, #tpu.dimension_semantics<parallel>, #tpu.dimension_semantics<arbitrary>], iteration_bounds = array<i64: 1, 1, 1>, scalar_prefetch = 0 : i64, scratch_operands = 1 : i64, tpu.core_type = #tpu.core_type<tc>, window_params = [{transform_indices = @transform_0, window_bounds = array<i64: 32, 128>}, {transform_indices = @transform_1, window_bounds = array<i64: 128, 128>}, {transform_indices = @transform_2, window_bounds = array<i64: 1, 128>}, {transform_indices = @transform_3, window_bounds = array<i64: 32, 128>}, {transform_indices = @transform_4, window_bounds = array<i64: 32, 128>}]} {
    %c0_i32 = arith.constant 0 : i32
    %0 = arith.cmpi eq, %arg2, %c0_i32 : i32
    %1 = arith.extui %0 : i1 to i32
    %c0_i32_0 = arith.constant 0 : i32
    %2 = arith.cmpi ne, %1, %c0_i32_0 : i32
    scf.if %2 {
      %cst_10 = arith.constant 0.000000e+00 : f32
      %12 = vector.broadcast %cst_10 : f32 to vector<32x128xf32>
      %c0_11 = arith.constant 0 : index
      %c0_12 = arith.constant 0 : index
      %13 = vector.load %arg8[%c0_11, %c0_12] : memref<32x128xf32, #tpu.memory_space<vmem>>, vector<32x128xf32>
      tpu.vector_store %arg8[%c0_11, %c0_12], %12 {strides = array<i32>} : memref<32x128xf32, #tpu.memory_space<vmem>>, vector<32x128xf32>,
    } else {
    }
    %c0 = arith.constant 0 : index
    %c0_1 = arith.constant 0 : index
    %3 = vector.load %arg3[%c0, %c0_1] : memref<32x128xbf16, #tpu.memory_space<vmem>>, vector<32x128xbf16>
    %c0_2 = arith.constant 0 : index
    %c0_3 = arith.constant 0 : index
    %4 = vector.load %arg8[%c0_2, %c0_3] : memref<32x128xf32, #tpu.memory_space<vmem>>, vector<32x128xf32>
    %c0_4 = arith.constant 0 : index
    %c0_5 = arith.constant 0 : index
    %5 = vector.load %arg4[%c0_4, %c0_5] : memref<128x128xbf16, #tpu.memory_space<vmem>>, vector<128x128xbf16>
    %cst = arith.constant dense<0.000000e+00> : vector<32x128xf32>
    %6 = tpu.matmul %3, %5, %cst {dimension_numbers = #tpu.dot_dimension_numbers<[1], [0], [0], [1], [0, 0, 1, 1], [], []>} : vector<32x128xbf16>, vector<128x128xbf16>, vector<32x128xf32> -> vector<32x128xf32>
    %7 = arith.addf %4, %6 : vector<32x128xf32>
    %c0_6 = arith.constant 0 : index
    %c0_7 = arith.constant 0 : index
    %8 = vector.load %arg8[%c0_6, %c0_7] : memref<32x128xf32, #tpu.memory_space<vmem>>, vector<32x128xf32>
    tpu.vector_store %arg8[%c0_6, %c0_7], %7 {strides = array<i32>} : memref<32x128xf32, #tpu.memory_space<vmem>>, vector<32x128xf32>,
    %c0_i32_8 = arith.constant 0 : i32
    %9 = arith.cmpi eq, %arg2, %c0_i32_8 : i32
    %10 = arith.extui %9 : i1 to i32
    %c0_i32_9 = arith.constant 0 : i32
    %11 = arith.cmpi ne, %10, %c0_i32_9 : i32
    scf.if %11 {
      %c0_10 = arith.constant 0 : index
      %c0_11 = arith.constant 0 : index
      %12 = vector.load %arg8[%c0_10, %c0_11] : memref<32x128xf32, #tpu.memory_space<vmem>>, vector<32x128xf32>
      %c0_12 = arith.constant 0 : index
      %c0_13 = arith.constant 0 : index
      %13 = vector.load %arg5[%c0_12, %c0_13] : memref<1x128xf32, #tpu.memory_space<vmem>>, vector<1x128xf32>
      %14 = vector.broadcast %13 : vector<1x128xf32> to vector<32x128xf32>
      %15 = arith.addf %12, %14 : vector<32x128xf32>
      %c0_14 = arith.constant 0 : index
      %c0_15 = arith.constant 0 : index
      %16 = vector.load %arg6[%c0_14, %c0_15] : memref<32x128xbf16, #tpu.memory_space<vmem>>, vector<32x128xbf16>
      %17 = arith.extf %16 : vector<32x128xbf16> to vector<32x128xf32>
      %18 = arith.addf %15, %17 : vector<32x128xf32>
      %19 = arith.truncf %18 : vector<32x128xf32> to vector<32x128xbf16>
      %c0_16 = arith.constant 0 : index
      %c0_17 = arith.constant 0 : index
      %20 = vector.load %arg7[%c0_16, %c0_17] : memref<32x128xbf16, #tpu.memory_space<vmem>>, vector<32x128xbf16>
      tpu.vector_store %arg7[%c0_16, %c0_17], %19 {strides = array<i32>} : memref<32x128xbf16, #tpu.memory_space<vmem>>, vector<32x128xbf16>,
    } else {
    }
    return
  }
  func.func @transform_0(%arg0: i32, %arg1: i32, %arg2: i32) -> (i32, i32) {
    %c0_i32 = arith.constant 0 : i32
    return %arg0, %arg2 : i32, i32
  }
  func.func @transform_1(%arg0: i32, %arg1: i32, %arg2: i32) -> (i32, i32) {
    %c0_i32 = arith.constant 0 : i32
    return %arg2, %arg1 : i32, i32
  }
  func.func @transform_2(%arg0: i32, %arg1: i32, %arg2: i32) -> (i32, i32) {
    %c0_i32 = arith.constant 0 : i32
    %c0_i32_0 = arith.constant 0 : i32
    return %c0_i32, %arg1 : i32, i32
  }
  func.func @transform_3(%arg0: i32, %arg1: i32, %arg2: i32) -> (i32, i32) {
    %c0_i32 = arith.constant 0 : i32
    return %arg0, %arg1 : i32, i32
  }
  func.func @transform_4(%arg0: i32, %arg1: i32, %arg2: i32) -> (i32, i32) {
    %c0_i32 = arith.constant 0 : i32
    return %arg0, %arg1 : i32, i32
  }
}

module attributes {stable_mosaic.version = 11 : i64} {
  func.func @_linear_kernel(%arg0: i32, %arg1: i32, %arg2: i32, %arg3: memref<32x128xbf16, #tpu.memory_space<vmem>>, %arg4: memref<128x256xbf16, #tpu.memory_space<vmem>>, %arg5: memref<1x256xf32, #tpu.memory_space<vmem>>, %arg6: memref<1x128xf32, #tpu.memory_space<vmem>>, %arg7: memref<1x128xf32, #tpu.memory_space<vmem>>, %arg8: memref<32x256xbf16, #tpu.memory_space<vmem>>, %arg9: memref<32x256xf32, #tpu.memory_space<vmem>>) attributes {dimension_semantics = [#tpu.dimension_semantics<parallel>, #tpu.dimension_semantics<parallel>, #tpu.dimension_semantics<arbitrary>], iteration_bounds = array<i64: 1, 2, 1>, scalar_prefetch = 0 : i64, scratch_operands = 1 : i64, tpu.core_type = #tpu.core_type<tc>, window_params = [{transform_indices = @transform_0, window_bounds = array<i64: 32, 128>}, {transform_indices = @transform_1, window_bounds = array<i64: 128, 256>}, {transform_indices = @transform_2, window_bounds = array<i64: 1, 256>}, {pipeline_mode = #tpu.pipeline_mode<synchronous>, transform_indices = @transform_3, window_bounds = array<i64: 1, 128>}, {pipeline_mode = #tpu.pipeline_mode<synchronous>, transform_indices = @transform_4, window_bounds = array<i64: 1, 128>}, {transform_indices = @transform_5, window_bounds = array<i64: 32, 256>}]} {
    %c0_i32 = arith.constant 0 : i32
    %0 = arith.cmpi eq, %arg2, %c0_i32 : i32
    %1 = arith.extui %0 : i1 to i32
    %c0_i32_0 = arith.constant 0 : i32
    %2 = arith.cmpi ne, %1, %c0_i32_0 : i32
    scf.if %2 {
      %cst_19 = arith.constant 0.000000e+00 : f32
      %38 = vector.broadcast %cst_19 : f32 to vector<32x256xf32>
      %c0_20 = arith.constant 0 : index
      %c0_21 = arith.constant 0 : index
      %39 = vector.load %arg9[%c0_20, %c0_21] : memref<32x256xf32, #tpu.memory_space<vmem>>, vector<32x256xf32>
      tpu.vector_store %arg9[%c0_20, %c0_21], %38 {strides = array<i32>} : memref<32x256xf32, #tpu.memory_space<vmem>>, vector<32x256xf32>,
    } else {
    }
    %c0 = arith.constant 0 : index
    %c0_1 = arith.constant 0 : index
    %3 = vector.load %arg3[%c0, %c0_1] : memref<32x128xbf16, #tpu.memory_space<vmem>>, vector<32x128xbf16>
    %4 = arith.extf %3 : vector<32x128xbf16> to vector<32x128xf32>
    %cst = arith.constant dense<0.000000e+00> : vector<32xf32>
    %5 = vector.multi_reduction <add>, %4, %cst [1] : vector<32x128xf32> to vector<32xf32>
    %6 = vector.shape_cast %5 : vector<32xf32> to vector<32x1xf32>
    %cst_2 = arith.constant 1.280000e+02 : f32
    %7 = vector.broadcast %cst_2 : f32 to vector<32x1xf32>
    %8 = arith.divf %6, %7 : vector<32x1xf32>
    %9 = vector.broadcast %8 : vector<32x1xf32> to vector<32x128xf32>
    %10 = arith.subf %4, %9 : vector<32x128xf32>
    %11 = arith.mulf %10, %10 : vector<32x128xf32>
    %cst_3 = arith.constant dense<0.000000e+00> : vector<32xf32>
    %12 = vector.multi_reduction <add>, %11, %cst_3 [1] : vector<32x128xf32> to vector<32xf32>
    %13 = vector.shape_cast %12 : vector<32xf32> to vector<32x1xf32>
    %cst_4 = arith.constant 1.280000e+02 : f32
    %14 = vector.broadcast %cst_4 : f32 to vector<32x1xf32>
    %15 = arith.divf %13, %14 : vector<32x1xf32>
    %16 = vector.broadcast %8 : vector<32x1xf32> to vector<32x128xf32>
    %17 = arith.subf %4, %16 : vector<32x128xf32>
    %cst_5 = arith.constant 1.1920929E-7 : f32
    %18 = vector.broadcast %cst_5 : f32 to vector<32x1xf32>
    %19 = arith.addf %15, %18 : vector<32x1xf32>
    %20 = math.rsqrt %19 : vector<32x1xf32>
    %21 = vector.broadcast %20 : vector<32x1xf32> to vector<32x128xf32>
    %22 = arith.mulf %17, %21 : vector<32x128xf32>
    %c0_6 = arith.constant 0 : index
    %c0_7 = arith.constant 0 : index
    %23 = vector.load %arg6[%c0_6, %c0_7] : memref<1x128xf32, #tpu.memory_space<vmem>>, vector<1x128xf32>
    %24 = vector.broadcast %23 : vector<1x128xf32> to vector<32x128xf32>
    %25 = arith.mulf %22, %24 : vector<32x128xf32>
    %c0_8 = arith.constant 0 : index
    %c0_9 = arith.constant 0 : index
    %26 = vector.load %arg7[%c0_8, %c0_9] : memref<1x128xf32, #tpu.memory_space<vmem>>, vector<1x128xf32>
    %27 = vector.broadcast %26 : vector<1x128xf32> to vector<32x128xf32>
    %28 = arith.addf %25, %27 : vector<32x128xf32>
    %29 = arith.truncf %28 : vector<32x128xf32> to vector<32x128xbf16>
    %c0_10 = arith.constant 0 : index
    %c0_11 = arith.constant 0 : index
    %30 = vector.load %arg9[%c0_10, %c0_11] : memref<32x256xf32, #tpu.memory_space<vmem>>, vector<32x256xf32>
    %c0_12 = arith.constant 0 : index
    %c0_13 = arith.constant 0 : index
    %31 = vector.load %arg4[%c0_12, %c0_13] : memref<128x256xbf16, #tpu.memory_space<vmem>>, vector<128x256xbf16>
    %cst_14 = arith.constant dense<0.000000e+00> : vector<32x256xf32>
    %32 = tpu.matmul %29, %31, %cst_14 {dimension_numbers = #tpu.dot_dimension_numbers<[1], [0], [0], [1], [0, 0, 1, 1], [], []>} : vector<32x128xbf16>, vector<128x256xbf16>, vector<32x256xf32> -> vector<32x256xf32>
    %33 = arith.addf %30, %32 : vector<32x256xf32>
    %c0_15 = arith.constant 0 : index
    %c0_16 = arith.constant 0 : index
    %34 = vector.load %arg9[%c0_15, %c0_16] : memref<32x256xf32, #tpu.memory_space<vmem>>, vector<32x256xf32>
    tpu.vector_store %arg9[%c0_15, %c0_16], %33 {strides = array<i32>} : memref<32x256xf32, #tpu.memory_space<vmem>>, vector<32x256xf32>,
    %c0_i32_17 = arith.constant 0 : i32
    %35 = arith.cmpi eq, %arg2, %c0_i32_17 : i32
    %36 = arith.extui %35 : i1 to i32
    %c0_i32_18 = arith.constant 0 : i32
    %37 = arith.cmpi ne, %36, %c0_i32_18 : i32
    scf.if %37 {
      %c0_19 = arith.constant 0 : index
      %c0_20 = arith.constant 0 : index
      %38 = vector.load %arg9[%c0_19, %c0_20] : memref<32x256xf32, #tpu.memory_space<vmem>>, vector<32x256xf32>
      %c0_21 = arith.constant 0 : index
      %c0_22 = arith.constant 0 : index
      %39 = vector.load %arg5[%c0_21, %c0_22] : memref<1x256xf32, #tpu.memory_space<vmem>>, vector<1x256xf32>
      %40 = vector.broadcast %39 : vector<1x256xf32> to vector<32x256xf32>
      %41 = arith.addf %38, %40 : vector<32x256xf32>
      %cst_23 = arith.constant 5.000000e-01 : f32
      %42 = vector.broadcast %cst_23 : f32 to vector<32x256xf32>
      %43 = arith.mulf %42, %41 : vector<32x256xf32>
      %cst_24 = arith.constant 0.707106769 : f32
      %44 = vector.broadcast %cst_24 : f32 to vector<32x256xf32>
      %45 = arith.mulf %41, %44 : vector<32x256xf32>
      %cst_25 = arith.constant 0.000000e+00 : f32
      %46 = vector.broadcast %cst_25 : f32 to vector<32x256xf32>
      %47 = arith.cmpf oge, %45, %46 : vector<32x256xf32>
      %cst_26 = arith.constant 1.000000e+00 : f32
      %cst_27 = arith.constant -1.000000e+00 : f32
      %48 = vector.broadcast %cst_26 : f32 to vector<32x256xf32>
      %49 = vector.broadcast %cst_27 : f32 to vector<32x256xf32>
      %50 = arith.select %47, %48, %49 : vector<32x256xi1>, vector<32x256xf32>
      %51 = math.absf %45 : vector<32x256xf32>
      %cst_28 = arith.constant 0.327591091 : f32
      %52 = vector.broadcast %cst_28 : f32 to vector<32x256xf32>
      %53 = arith.mulf %52, %51 : vector<32x256xf32>
      %cst_29 = arith.constant 1.000000e+00 : f32
      %54 = vector.broadcast %cst_29 : f32 to vector<32x256xf32>
      %55 = arith.addf %54, %53 : vector<32x256xf32>
      %cst_30 = arith.constant 1.000000e+00 : f32
      %56 = vector.broadcast %cst_30 : f32 to vector<32x256xf32>
      %57 = arith.divf %56, %55 : vector<32x256xf32>
      %cst_31 = arith.constant 1.06140542 : f32
      %58 = vector.broadcast %cst_31 : f32 to vector<32x256xf32>
      %59 = arith.mulf %58, %57 : vector<32x256xf32>
      %cst_32 = arith.constant -1.45315206 : f32
      %60 = vector.broadcast %cst_32 : f32 to vector<32x256xf32>
      %61 = arith.addf %59, %60 : vector<32x256xf32>
      %62 = arith.mulf %61, %57 : vector<32x256xf32>
      %cst_33 = arith.constant 1.42141378 : f32
      %63 = vector.broadcast %cst_33 : f32 to vector<32x256xf32>
      %64 = arith.addf %62, %63 : vector<32x256xf32>
      %65 = arith.mulf %64, %57 : vector<32x256xf32>
      %cst_34 = arith.constant -0.284496725 : f32
      %66 = vector.broadcast %cst_34 : f32 to vector<32x256xf32>
      %67 = arith.addf %65, %66 : vector<32x256xf32>
      %68 = arith.mulf %67, %57 : vector<32x256xf32>
      %cst_35 = arith.constant 0.254829586 : f32
      %69 = vector.broadcast %cst_35 : f32 to vector<32x256xf32>
      %70 = arith.addf %68, %69 : vector<32x256xf32>
      %71 = arith.mulf %70, %57 : vector<32x256xf32>
      %cst_36 = arith.constant 0.000000e+00 : f32
      %72 = vector.broadcast %cst_36 : f32 to vector<32x256xf32>
      %73 = arith.subf %72, %51 : vector<32x256xf32>
      %74 = arith.mulf %73, %51 : vector<32x256xf32>
      %75 = math.exp %74 : vector<32x256xf32>
      %76 = arith.mulf %71, %75 : vector<32x256xf32>
      %cst_37 = arith.constant 1.000000e+00 : f32
      %77 = vector.broadcast %cst_37 : f32 to vector<32x256xf32>
      %78 = arith.subf %77, %76 : vector<32x256xf32>
      %79 = arith.mulf %50, %78 : vector<32x256xf32>
      %cst_38 = arith.constant 1.000000e+00 : f32
      %80 = vector.broadcast %cst_38 : f32 to vector<32x256xf32>
      %81 = arith.addf %80, %79 : vector<32x256xf32>
      %82 = arith.mulf %43, %81 : vector<32x256xf32>
      %83 = arith.truncf %82 : vector<32x256xf32> to vector<32x256xbf16>
      %c0_39 = arith.constant 0 : index
      %c0_40 = arith.constant 0 : index
      %84 = vector.load %arg8[%c0_39, %c0_40] : memref<32x256xbf16, #tpu.memory_space<vmem>>, vector<32x256xbf16>
      tpu.vector_store %arg8[%c0_39, %c0_40], %83 {strides = array<i32>} : memref<32x256xbf16, #tpu.memory_space<vmem>>, vector<32x256xbf16>,
    } else {
    }
    return
  }
  func.func @transform_0(%arg0: i32, %arg1: i32, %arg2: i32) -> (i32, i32) {
    %c0_i32 = arith.constant 0 : i32
    return %arg0, %arg2 : i32, i32
  }
  func.func @transform_1(%arg0: i32, %arg1: i32, %arg2: i32) -> (i32, i32) {
    %c0_i32 = arith.constant 0 : i32
    return %arg2, %arg1 : i32, i32
  }
  func.func @transform_2(%arg0: i32, %arg1: i32, %arg2: i32) -> (i32, i32) {
    %c0_i32 = arith.constant 0 : i32
    %c0_i32_0 = arith.constant 0 : i32
    return %c0_i32, %arg1 : i32, i32
  }
  func.func @transform_3(%arg0: i32, %arg1: i32, %arg2: i32) -> (i32, i32) {
    %c0_i32 = arith.constant 0 : i32
    %c0_i32_0 = arith.constant 0 : i32
    %c0_i32_1 = arith.constant 0 : i32
    return %c0_i32, %c0_i32_0 : i32, i32
  }
  func.func @transform_4(%arg0: i32, %arg1: i32, %arg2: i32) -> (i32, i32) {
    %c0_i32 = arith.constant 0 : i32
    %c0_i32_0 = arith.constant 0 : i32
    %c0_i32_1 = arith.constant 0 : i32
    return %c0_i32, %c0_i32_0 : i32, i32
  }
  func.func @transform_5(%arg0: i32, %arg1: i32, %arg2: i32) -> (i32, i32) {
    %c0_i32 = arith.constant 0 : i32
    return %arg0, %arg1 : i32, i32
  }
}

module attributes {stable_mosaic.version = 11 : i64} {
  func.func @_linear_kernel(%arg0: i32, %arg1: i32, %arg2: i32, %arg3: memref<32x512xbf16, #tpu.memory_space<vmem>>, %arg4: memref<512x128xbf16, #tpu.memory_space<vmem>>, %arg5: memref<1x128xf32, #tpu.memory_space<vmem>>, %arg6: memref<32x128xbf16, #tpu.memory_space<vmem>>, %arg7: memref<32x128xbf16, #tpu.memory_space<vmem>>, %arg8: memref<32x128xf32, #tpu.memory_space<vmem>>) attributes {dimension_semantics = [#tpu.dimension_semantics<parallel>, #tpu.dimension_semantics<parallel>, #tpu.dimension_semantics<arbitrary>], iteration_bounds = array<i64: 1, 1, 1>, scalar_prefetch = 0 : i64, scratch_operands = 1 : i64, tpu.core_type = #tpu.core_type<tc>, window_params = [{transform_indices = @transform_0, window_bounds = array<i64: 32, 512>}, {transform_indices = @transform_1, window_bounds = array<i64: 512, 128>}, {transform_indices = @transform_2, window_bounds = array<i64: 1, 128>}, {transform_indices = @transform_3, window_bounds = array<i64: 32, 128>}, {transform_indices = @transform_4, window_bounds = array<i64: 32, 128>}]} {
    %c0_i32 = arith.constant 0 : i32
    %0 = arith.cmpi eq, %arg2, %c0_i32 : i32
    %1 = arith.extui %0 : i1 to i32
    %c0_i32_0 = arith.constant 0 : i32
    %2 = arith.cmpi ne, %1, %c0_i32_0 : i32
    scf.if %2 {
      %cst_10 = arith.constant 0.000000e+00 : f32
      %12 = vector.broadcast %cst_10 : f32 to vector<32x128xf32>
      %c0_11 = arith.constant 0 : index
      %c0_12 = arith.constant 0 : index
      %13 = vector.load %arg8[%c0_11, %c0_12] : memref<32x128xf32, #tpu.memory_space<vmem>>, vector<32x128xf32>
      tpu.vector_store %arg8[%c0_11, %c0_12], %12 {strides = array<i32>} : memref<32x128xf32, #tpu.memory_space<vmem>>, vector<32x128xf32>,
    } else {
    }
    %c0 = arith.constant 0 : index
    %c0_1 = arith.constant 0 : index
    %3 = vector.load %arg3[%c0, %c0_1] : memref<32x512xbf16, #tpu.memory_space<vmem>>, vector<32x512xbf16>
    %c0_2 = arith.constant 0 : index
    %c0_3 = arith.constant 0 : index
    %4 = vector.load %arg8[%c0_2, %c0_3] : memref<32x128xf32, #tpu.memory_space<vmem>>, vector<32x128xf32>
    %c0_4 = arith.constant 0 : index
    %c0_5 = arith.constant 0 : index
    %5 = vector.load %arg4[%c0_4, %c0_5] : memref<512x128xbf16, #tpu.memory_space<vmem>>, vector<512x128xbf16>
    %cst = arith.constant dense<0.000000e+00> : vector<32x128xf32>
    %6 = tpu.matmul %3, %5, %cst {dimension_numbers = #tpu.dot_dimension_numbers<[1], [0], [0], [1], [0, 0, 1, 1], [], []>} : vector<32x512xbf16>, vector<512x128xbf16>, vector<32x128xf32> -> vector<32x128xf32>
    %7 = arith.addf %4, %6 : vector<32x128xf32>
    %c0_6 = arith.constant 0 : index
    %c0_7 = arith.constant 0 : index
    %8 = vector.load %arg8[%c0_6, %c0_7] : memref<32x128xf32, #tpu.memory_space<vmem>>, vector<32x128xf32>
    tpu.vector_store %arg8[%c0_6, %c0_7], %7 {strides = array<i32>} : memref<32x128xf32, #tpu.memory_space<vmem>>, vector<32x128xf32>,
    %c0_i32_8 = arith.constant 0 : i32
    %9 = arith.cmpi eq, %arg2, %c0_i32_8 : i32
    %10 = arith.extui %9 : i1 to i32
    %c0_i32_9 = arith.constant 0 : i32
    %11 = arith.cmpi ne, %10, %c0_i32_9 : i32
    scf.if %11 {
      %c0_10 = arith.constant 0 : index
      %c0_11 = arith.constant 0 : index
      %12 = vector.load %arg8[%c0_10, %c0_11] : memref<32x128xf32, #tpu.memory_space<vmem>>, vector<32x128xf32>
      %c0_12 = arith.constant 0 : index
      %c0_13 = arith.constant 0 : index
      %13 = vector.load %arg5[%c0_12, %c0_13] : memref<1x128xf32, #tpu.memory_space<vmem>>, vector<1x128xf32>
      %14 = vector.broadcast %13 : vector<1x128xf32> to vector<32x128xf32>
      %15 = arith.addf %12, %14 : vector<32x128xf32>
      %c0_14 = arith.constant 0 : index
      %c0_15 = arith.constant 0 : index
      %16 = vector.load %arg6[%c0_14, %c0_15] : memref<32x128xbf16, #tpu.memory_space<vmem>>, vector<32x128xbf16>
      %17 = arith.extf %16 : vector<32x128xbf16> to vector<32x128xf32>
      %18 = arith.addf %15, %17 : vector<32x128xf32>
      %19 = arith.truncf %18 : vector<32x128xf32> to vector<32x128xbf16>
      %c0_16 = arith.constant 0 : index
      %c0_17 = arith.constant 0 : index
      %20 = vector.load %arg7[%c0_16, %c0_17] : memref<32x128xbf16, #tpu.memory_space<vmem>>, vector<32x128xbf16>
      tpu.vector_store %arg7[%c0_16, %c0_17], %19 {strides = array<i32>} : memref<32x128xbf16, #tpu.memory_space<vmem>>, vector<32x128xbf16>,
    } else {
    }
    return
  }
  func.func @transform_0(%arg0: i32, %arg1: i32, %arg2: i32) -> (i32, i32) {
    %c0_i32 = arith.constant 0 : i32
    return %arg0, %arg2 : i32, i32
  }
  func.func @transform_1(%arg0: i32, %arg1: i32, %arg2: i32) -> (i32, i32) {
    %c0_i32 = arith.constant 0 : i32
    return %arg2, %arg1 : i32, i32
  }
  func.func @transform_2(%arg0: i32, %arg1: i32, %arg2: i32) -> (i32, i32) {
    %c0_i32 = arith.constant 0 : i32
    %c0_i32_0 = arith.constant 0 : i32
    return %c0_i32, %arg1 : i32, i32
  }
  func.func @transform_3(%arg0: i32, %arg1: i32, %arg2: i32) -> (i32, i32) {
    %c0_i32 = arith.constant 0 : i32
    return %arg0, %arg1 : i32, i32
  }
  func.func @transform_4(%arg0: i32, %arg1: i32, %arg2: i32) -> (i32, i32) {
    %c0_i32 = arith.constant 0 : i32
    return %arg0, %arg1 : i32, i32
  }
}

</mosaic_0001>

<bundles_post_ra>
// kernel: text_transformer_forward.10
= control target key start
LH: loop header
LB: loop body
LE: loop exit
PB: predicated region body
PF: predicated region fallthrough
CT: control target
= control target key end

     0   :  { %s1019_s18 = smov 0   ;;  %s1021_s19 = smov 0   ;;  %s1140_s0 = inlined_call_operand.vmem [shape: bf16[32,128], index: 0, kind: input, shape index: {}]   ;;  %s1141_s1 = inlined_call_operand.vmem [shape: bf16[128,384], index: 1, kind: input, shape index: {}]   ;;  %s1142_s2 = inlined_call_operand.vmem [shape: f32[1,384], index: 2, kind: input, shape index: {}]   ;;  %s1143_s3 = inlined_call_operand.vmem [shape: f32[1,128], index: 3, kind: input, shape index: {}]   ;;  %s1144_s4 = inlined_call_operand.vmem [shape: f32[1,128], index: 4, kind: input, shape index: {}]   ;;  %s1145_s5 = inlined_call_operand.vmem [shape: bf16[32,384], index: 5, kind: output, shape index: {}]  }
   0x1   :  { %s1023_s20 = smov 0   ;;  %s1025_s21 = smov 0  }
   0x2   :  { %s1027_s22 = smov 0  }
   0x3 LB: > { %s30_s23 = sadd.s32 1, %s983_s21  ;;  %s810_s24 = sadd.s32 4294967295, %s987_s22   ;;  %s987_s22 = sphi %s1027_s22, %s15_s22   ;;  %s983_s21 = sphi %s1025_s21, %s1150_s21   ;;  %s979_s20 = sphi %s1023_s20, %s1149_s20   ;;  %s975_s19 = sphi %s1021_s19, %s1148_s19   ;;  %s971_s18 = sphi %s1019_s18, %s1147_s18  }
   0x4   : > { %p32_p0 = scmp.ge.s32.totalorder %s30_s23, 3  ;;  %p78_p1 = scmp.ne.s32.totalorder %s975_s19, %s971_s18 }
   0x5   : > { %p79_p2 = scmp.eq.s32.totalorder %s987_s22, 0  ;;  %p178_p4 = scmp.eq.s32.totalorder %s810_s24, 2 }
   0x6   : > { %s1152_s23 = smov (%p32_p0, %s30_s23), 0  ;;  %s71_s26 = sadd.s32 1, %s975_s19 }
   0x7   : > { %p80_p3 = por %p79_p2, %p78_p1  ;;  %s67_s25 = ssub.s32 %s983_s21, %s1152_s23 }
   0x8   : > { %p69_p5 = scmp.eq.s32.totalorder %s67_s25, 0  ;;  %p1054_p6 = por %p178_p4, %p78_p1 }
   0x9   : > { %p814_p7 = scmp.ge.s32.totalorder %s987_s22, 3 }
   0xa   : > { %s1059_s28 = scalar_select %p69_p5, %s975_s19, %s71_s26  }
   0xb   : > { %218 = sbr.rel (%p814_p7) target bundleno = 30 (0x1e), region = 28 }
  0x10   : > { %221 = sbr.rel (!%p80_p3) target bundleno = 30 (0x1e), region = 32  ;;  %s223_s29 = sand.u32 (%p80_p3), 1, %s975_s19  }
  0x11   : > { %s816_s30 = sshll.u32 (%p80_p3), %s983_s21, 2  ;;  %s815_s6 = sshll.u32 (%p80_p3), %s223_s29, 6 }
  0x12   : > { %s1067_s9 = scalar_lea.vmem (%p80_p3), %s1141_s1, %s816_s30  ;;  %s225_s10 = scalar_lea.vmem (%p80_p3), [#allocation3], %s815_s6 }
  0x13   : > { %v247_v0 = vld [vmem:[%s1067_s9] sm:$0xf] (%p80_p3)  ;;  %v249_v1 = vld [vmem:[%s1067_s9 + $0xc] sm:$0xf] (%p80_p3)  ;;  %v251_v2 = vld [vmem:[%s1067_s9 + $0x18] sm:$0xf] (%p80_p3) }
  0x14   : > { %248 = vst [vmem:[%s225_s10] sm:$0xf] (%p80_p3), %v247_v0  ;;  %250 = vst [vmem:[%s225_s10 + $0x4] sm:$0xf] (%p80_p3), %v249_v1  ;;  %v253_v3 = vld [vmem:[%s1067_s9 + $0x24] sm:$0xf] (%p80_p3) }
  0x15   : > { %v255_v4 = vld [vmem:[%s1067_s9 + $0x30] sm:$0xf]  ;;  %252 = vst [vmem:[%s225_s10 + $0x8] sm:$0xf] %v251_v2  ;;  %254 = vst [vmem:[%s225_s10 + $0xc] sm:$0xf] %v253_v3 }
  0x16   : > { %256 = vst [vmem:[%s225_s10 + $0x10] sm:$0xf] %v255_v4  ;;  %v257_v5 = vld [vmem:[%s1067_s9 + $0x3c] sm:$0xf]  ;;  %v259_v6 = vld [vmem:[%s1067_s9 + $0x48] sm:$0xf] }
  0x17   : > { %v261_v7 = vld [vmem:[%s1067_s9 + $0x54] sm:$0xf]  ;;  %258 = vst [vmem:[%s225_s10 + $0x14] sm:$0xf] %v257_v5  ;;  %260 = vst [vmem:[%s225_s10 + $0x18] sm:$0xf] %v259_v6 }
  0x18   : > { %262 = vst [vmem:[%s225_s10 + $0x1c] sm:$0xf] %v261_v7  ;;  %v263_v8 = vld [vmem:[%s1067_s9 + $0x60] sm:$0xf]  ;;  %v265_v9 = vld [vmem:[%s1067_s9 + $0x6c] sm:$0xf] }
  0x19   : > { %v267_v10 = vld [vmem:[%s1067_s9 + $0x78] sm:$0xf]  ;;  %264 = vst [vmem:[%s225_s10 + $0x20] sm:$0xf] %v263_v8  ;;  %266 = vst [vmem:[%s225_s10 + $0x24] sm:$0xf] %v265_v9 }
  0x1a   : > { %268 = vst [vmem:[%s225_s10 + $0x28] sm:$0xf] %v267_v10  ;;  %v269_v11 = vld [vmem:[%s1067_s9 + $0x84] sm:$0xf]  ;;  %v271_v12 = vld [vmem:[%s1067_s9 + $0x90] sm:$0xf] }
  0x1b   : > { %v273_v13 = vld [vmem:[%s1067_s9 + $0x9c] sm:$0xf]  ;;  %270 = vst [vmem:[%s225_s10 + $0x2c] sm:$0xf] %v269_v11  ;;  %272 = vst [vmem:[%s225_s10 + $0x30] sm:$0xf] %v271_v12 }
  0x1c   : > { %274 = vst [vmem:[%s225_s10 + $0x34] sm:$0xf] %v273_v13  ;;  %v275_v14 = vld [vmem:[%s1067_s9 + $0xa8] sm:$0xf]  ;;  %v277_v15 = vld [vmem:[%s1067_s9 + $0xb4] sm:$0xf] }
  0x1d   : > { %276 = vst [vmem:[%s225_s10 + $0x38] sm:$0xf] %v275_v14  ;;  %278 = vst [vmem:[%s225_s10 + $0x3c] sm:$0xf] %v277_v15 }
  0x1e PF: > { %p817_p8 = scmp.ge.s32.totalorder %s987_s22, 1  ;;  %p339_p9 = scmp.lt.s32.totalorder %s987_s22, 4 }
  0x20   : > { %p340_p10 = pnand %p817_p8, %p339_p9 }
  0x21   : > { %s346_s15 = sand.u32 (!%p340_p10), 1, %s971_s18   ;;  %p393_p11 = scmp.lt.s32.totalorder (!%p340_p10), %s979_s20, 2 }
  0x22   : > { %343 = sbr.rel (%p340_p10) target bundleno = 570 (0x23a), region = 77  ;;  %s818_s16 = sshll.u32 (!%p340_p10), %s346_s15, 6 }
  0x23   : > { %s348_s17 = scalar_lea.vmem (!%p340_p10), [#allocation3], %s818_s16  ;;  %s819_s9 = sshll.u32 (!%p340_p10), %s346_s15, 4 }
  0x24   : > { %s382_s10 = scalar_lea.vmem (!%p340_p10), [#allocation4], %s819_s9 }
  0x27   : > { %v844_v16 = vld [vmem:[%s1140_s0] sm:$0xff]   ;;  %v861_v17 = vld [vmem:[%s1140_s0 + $0x8] sm:$0xff]   ;;  %v933_v38 = vld [vmem:[%s348_s17 + $0x38] sm:$0xff]   ;;  %s394_s30 = scalar_select %p393_p11, %s979_s20, 2 }
  0x28   : > { %v845_v18 = vunpack.c.l.bf16 %v844_v16  ;;  %v849_v19 = vunpack.c.l.bf16 %v861_v17  ;;  %v846_v20 = vunpack.c.h.bf16 %v844_v16  ;;  %v850_v21 = vunpack.c.h.bf16 %v861_v17  ;;  %873 = vmatprep.subr.bf16.mxu0 %v933_v38  ;;  %v934_v39 = vld [vmem:[%s348_s17 + $0x30] sm:$0xff]   ;;  %v935_v40 = vld [vmem:[%s348_s17 + $0x28] sm:$0xff]   ;;  %v936_v41 = vld [vmem:[%s348_s17 + $0x20] sm:$0xff]   ;;  %s836_s11 = sshll.u32 (%p1054_p6), %s979_s20, 2 }
  0x29   : > { %874 = vmatpush3.bf16.msra.mxu0 %v933_v38  ;;  %v937_v42 = vld [vmem:[%s348_s17 + $0x18] sm:$0xff]   ;;  %v938_v43 = vld [vmem:[%s348_s17 + $0x10] sm:$0xff]   ;;  %v939_v44 = vld [vmem:[%s348_s17 + $0x8] sm:$0xff]   ;;  %s395_s8 = scalar_lea.vmem %s1142_s2, %s394_s30  ;;  %s657_s13 = scalar_lea.vmem (%p1054_p6), %s1145_s5, %s836_s11 }
  0x2a   : > { %414 = vadd.xlane.f32.xlu0 %v845_v18  ;;  %418 = vadd.xlane.f32.xlu1 %v849_v19  ;;  %v940_v45 = vld [vmem:[%s348_s17] sm:$0xff]  }
  0x2b   : > { %875 = vmatprep.subr.bf16.mxu0 %v934_v39  ;;  %v820_v60 = vld [vmem:[%s1143_s3] ss:$0 sm:$0xff] }
  0x2c   : > { %v821_v1 = vld [vmem:[%s1144_s4] ss:$0 sm:$0xff] }
  0x2d   : > { %876 = vmatpush3.bf16.msra.mxu0 %v934_v39  ;;  %v830_v15 = vld [vmem:[%s395_s8] ss:$0 sm:$0xff] }
  0x2e   : > { %416 = vadd.xlane.f32.xlu0 %v846_v20  ;;  %420 = vadd.xlane.f32.xlu1 %v850_v21 }
  0x2f   : > { %877 = vmatprep.subr.bf16.mxu0 %v935_v40 }
  0x31   : > { %878 = vmatpush3.bf16.msra.mxu0 %v935_v40 }
  0x32   : > { %879 = vmatprep.subr.bf16.mxu0 %v936_v41 }
  0x35   : > { %880 = vmatpush3.bf16.msra.mxu0 %v936_v41 }
  0x36   : > { %881 = vmatprep.subr.bf16.mxu0 %v937_v42 }
  0x39   : > { %882 = vmatpush3.bf16.msra.mxu0 %v937_v42 }
  0x3a   : > { %883 = vmatprep.subr.bf16.mxu0 %v938_v43 }
  0x3d   : > { %884 = vmatpush3.bf16.msra.mxu0 %v938_v43 }
  0x3e   : > { %885 = vmatprep.subr.bf16.mxu0 %v939_v44 }
  0x41   : > { %886 = vmatpush3.bf16.msra.mxu0 %v939_v44 }
  0x42   : > { %887 = vmatprep.subr.bf16.mxu0 %v940_v45 }
  0x45   : > { %888 = vmatpush3.bf16.msra.mxu0 %v940_v45 }
  0xb3   : > { %v415_v22 = vpop.xlane.xlu0 %414  ;;  %v419_v23 = vpop.xlane.xlu1 %418 }
  0xb4   : > { %v423_v24 = vmul.f32 0.0078125, %v415_v22  ;;  %v425_v25 = vmul.f32 0.0078125, %v419_v23 }
  0xb6   : > { %v427_v26 = vsub.f32 %v845_v18, %v423_v24  ;;  %v1093_v27 = vsub.f32 %v849_v19, %v425_v25 }
  0xb7   : > { %v417_v28 = vpop.xlane.xlu0 %416  ;;  %v421_v29 = vpop.xlane.xlu1 %420 }
  0xb8   : > { %v424_v30 = vmul.f32 0.0078125, %v417_v28  ;;  %v431_v31 = vmul.f32 %v427_v26, %v427_v26  ;;  %v426_v32 = vmul.f32 0.0078125, %v421_v29  ;;  %v433_v35 = vmul.f32 %v1093_v27, %v1093_v27 }
  0xba   : > { %v428_v33 = vsub.f32 %v846_v20, %v424_v30  ;;  %435 = vadd.xlane.f32.xlu0 %v431_v31  ;;  %v1095_v34 = vsub.f32 %v850_v21, %v426_v32 }
  0xbc   : > { %v432_v36 = vmul.f32 %v428_v33, %v428_v33  ;;  %v434_v37 = vmul.f32 %v1095_v34, %v1095_v34 }
  0xbe   : > { %439 = vadd.xlane.f32.xlu0 %v433_v35  ;;  %437 = vadd.xlane.f32.xlu1 %v432_v36 }
  0xc2   : > { %441 = vadd.xlane.f32.xlu1 %v434_v37 }
 0x143   : > { %v436_v46 = vpop.xlane.xlu0 %435 }
 0x144   : > { %v443_v47 = vmul.f32 0.0078125, %v436_v46 }
 0x146   : > { %v447_v48 = vadd.f32 1.1920929e-07, %v443_v47 }
 0x147   : > { %v438_v49 = vpop.xlane.xlu1 %437  ;;  %v440_v50 = vpop.xlane.xlu0 %439 }
 0x148   : > { %941 = vrsqrt.f32 %v447_v48  ;;  %v444_v51 = vmul.f32 0.0078125, %v438_v49  ;;  %v445_v52 = vmul.f32 0.0078125, %v440_v50 }
 0x14a   : > { %v448_v53 = vadd.f32 1.1920929e-07, %v444_v51  ;;  %v449_v54 = vadd.f32 1.1920929e-07, %v445_v52 }
 0x14b   : > { %v442_v55 = vpop.xlane.xlu1 %441 }
 0x14c   : > { %943 = vrsqrt.f32 %v448_v53  ;;  %v446_v56 = vmul.f32 0.0078125, %v442_v55 }
 0x14d   : > { %945 = vrsqrt.f32 %v449_v54 }
 0x14e   : > { %v450_v57 = vadd.f32 1.1920929e-07, %v446_v56 }
 0x150   : > { %947 = vrsqrt.f32 %v450_v57 }
 0x155   : > { %v942_v58 = vpop.eup %941 }
 0x156   : > { %v455_v59 = vmul.f32 %v942_v58, %v427_v26 }
 0x158   : > { %v466_v0 = vmul.f32 %v820_v60, %v455_v59 }
 0x159   : > { %v944_v61 = vpop.eup %943 }
 0x15a   : > { %v946_v62 = vpop.eup %945  ;;  %v456_v63 = vmul.f32 %v944_v61, %v428_v33  ;;  %v477_v5 = vadd.f32 %v821_v1, %v466_v0 }
 0x15b   : > { %v457_v2 = vmul.f32 %v946_v62, %v1093_v27 }
 0x15c   : > { %v467_v3 = vmul.f32 %v820_v60, %v456_v63 }
 0x15d   : > { %v948_v4 = vpop.eup %947  ;;  %v468_v8 = vmul.f32 %v820_v60, %v457_v2 }
 0x15e   : > { %v478_v6 = vadd.f32 %v821_v1, %v467_v3  ;;  %v458_v7 = vmul.f32 %v948_v4, %v1095_v34 }
 0x15f   : > { %v479_v11 = vadd.f32 %v821_v1, %v468_v8 }
 0x160   : > { %v481_v9 = vpack.c.bf16 %v478_v6, %v477_v5  ;;  %v469_v10 = vmul.f32 %v820_v60, %v458_v7 }
 0x162   : > { %889 = vmatprep.mubr.bf16.mxu0 %v481_v9  ;;  %v480_v12 = vadd.f32 %v821_v1, %v469_v10 }
 0x164   : > { %v482_v13 = vpack.c.bf16 %v480_v12, %v479_v11 }
 0x166   : > { %890 = vmatmul.mubr.bf16.vlgmr.msra.gmra.mxu0 %v482_v13 }
 0x226   : > { %v891_v14 = vpop.f32.mrf.mxu0 }
 0x227   : > { %v624_v18 = vadd.f32 %v891_v14, %v830_v15 }
 0x228   : > { %v585_v16 = vpop.f32.mrf.mxu0 }
 0x229   : > { %v622_v21 = vadd.f32 %v830_v15, %v585_v16 }
 0x22a   : > { %v892_v17 = vpop.f32.mrf.mxu0 }
 0x22b   : > { %v625_v19 = vadd.f32 %v892_v17, %v830_v15 }
 0x22c   : > { %v588_v20 = vpop.f32.mrf.mxu0 }
 0x22d   : > { %v859_v22 = vpack.c.bf16 %v625_v19, %v624_v18  ;;  %v623_v23 = vadd.f32 %v830_v15, %v588_v20  ;;  %652 = sbr.rel (!%p1054_p6) target bundleno = 570 (0x23a), region = 93 }
 0x22f   : > { %862 = vst [vmem:[%s382_s10 + $0x8] sm:$0xff] %v859_v22   ;;  %v854_v24 = vpack.c.bf16 %v623_v23, %v622_v21 }
 0x231   : > { %855 = vst [vmem:[%s382_s10] sm:$0xff] %v854_v24  }
 0x236   : > { %v678_v27 = vld [vmem:[%s382_s10 + $0x8] sm:$0xf]  ;;  %v680_v28 = vld [vmem:[%s382_s10 + $0xc] sm:$0xf] }
 0x237   : > { %679 = vst [vmem:[%s657_s13 + $0x18] sm:$0xf] %v678_v27  ;;  %681 = vst [vmem:[%s657_s13 + $0x24] sm:$0xf] %v680_v28 }
 0x238   : > { %v674_v25 = vld [vmem:[%s382_s10] sm:$0xf]  ;;  %v676_v26 = vld [vmem:[%s382_s10 + $0x4] sm:$0xf] }
 0x239   : > { %675 = vst [vmem:[%s657_s13] sm:$0xf] %v674_v25  ;;  %677 = vst [vmem:[%s657_s13 + $0xc] sm:$0xf] %v676_v26 }
 0x23a PF: > { %s15_s22 = sadd.s32 1, %s987_s22   ;;  %s1147_s18 = smov %s975_s19 }
 0x23b   : > { %p12_p12 = scmp.ge.s32.totalorder %s15_s22, 5   ;;  %s1148_s19 = smov %s1059_s28 }
 0x23c   : > { %s1149_s20 = smov %s983_s21  ;;  %s1150_s21 = smov %s1152_s23 }
 0x23d   :  { %14 = sbr.rel (!%p12_p12) target bundleno = 3 (0x3), region = 171 }

// kernel: text_transformer_forward.11
= control target key start
LH: loop header
LB: loop body
LE: loop exit
PB: predicated region body
PF: predicated region fallthrough
CT: control target
= control target key end

     0   :  { %s1182_s6 = smov 0   ;;  %s1184_s7 = smov 0   ;;  %s1344_s0 = inlined_call_operand.vmem [shape: bf16[3,8,16,32], index: 0, kind: input, shape index: {}]   ;;  %s1345_s1 = inlined_call_operand.vmem [shape: bf16[8,16,32], index: 1, kind: output, shape index: {}]  }
   0x1   :  { %s1186_s8 = smov 0  }
   0x2 LB: > { %s942_s9 = sadd.s32 4294967295, %s1168_s8   ;;  %s1199_s10 = sadd.s32 1, %s1168_s8   ;;  %s1168_s8 = sphi %s1186_s8, %s1352_s8   ;;  %s1164_s7 = sphi %s1184_s7, %s1351_s7   ;;  %s1160_s6 = sphi %s1182_s6, %s1350_s6  }
   0x3   : > { %s15_s11 = ssub.s32 %s1168_s8, %s1199_s10  ;;  %s18_s12 = sadd.s32 1, %s1164_s7 }
   0x4   : > { %p16_p0 = scmp.eq.s32.totalorder %s15_s11, 0  ;;  %p25_p1 = scmp.ne.s32.totalorder %s1164_s7, %s1160_s6 }
   0x5   : > { %p26_p2 = scmp.eq.s32.totalorder %s1168_s8, 0  ;;  %p945_p4 = scmp.ge.s32.totalorder %s1168_s8, 2 }
   0x6   : > { %s1208_s13 = scalar_select %p16_p0, %s1164_s7, %s18_s12  }
   0x7   : > { %p27_p3 = por %p26_p2, %p25_p1  ;;  %77 = sbr.rel (%p945_p4) target bundleno = 23 (0x17), region = 16 }
   0xc   : > { %80 = sbr.rel (!%p27_p3) target bundleno = 23 (0x17), region = 20  ;;  %s82_s14 = sand.u32 (%p27_p3), 1, %s1164_s7  }
   0xd   : > { %s1000_s15 = sshll.u32 (%p27_p3), %s1168_s8, 5  ;;  %s1074_s16 = smul.u32 (%p27_p3), 96, %s82_s14 }
   0xe   : > { %s88_s19 = scalar_lea.vmem (%p27_p3), %s1344_s0, %s1000_s15 }
   0xf   : > { %v105_v0 = vld [vmem:[%s88_s19] sm:$0xff] (%p27_p3)   ;;  %v109_v1 = vld [vmem:[%s88_s19 + $0x8] sm:$0xff] (%p27_p3)   ;;  %v113_v2 = vld [vmem:[%s88_s19 + $0x10] sm:$0xff] (%p27_p3)   ;;  %s84_s20 = scalar_lea.vmem (%p27_p3), [#allocation2], %s1074_s16 }
  0x10   : > { %v117_v3 = vld [vmem:[%s88_s19 + $0x18] sm:$0xff] (%p27_p3)   ;;  %v121_v4 = vld [vmem:[%s88_s19 + $0x40] sm:$0xff] (%p27_p3)   ;;  %v125_v5 = vld [vmem:[%s88_s19 + $0x48] sm:$0xff] (%p27_p3)   ;;  %106 = vst [vmem:[%s84_s20] sm:$0xff] (%p27_p3), %v105_v0  }
  0x11   : > { %110 = vst [vmem:[%s84_s20 + $0x8] sm:$0xff] %v109_v1   ;;  %114 = vst [vmem:[%s84_s20 + $0x10] sm:$0xff] %v113_v2   ;;  %v129_v6 = vld [vmem:[%s88_s19 + $0x50] sm:$0xff]   ;;  %v133_v7 = vld [vmem:[%s88_s19 + $0x58] sm:$0xff]  }
  0x12   : > { %118 = vst [vmem:[%s84_s20 + $0x18] sm:$0xff] %v117_v3   ;;  %122 = vst [vmem:[%s84_s20 + $0x20] sm:$0xff] %v121_v4   ;;  %v137_v8 = vld [vmem:[%s88_s19 + $0x80] sm:$0xff]   ;;  %v141_v9 = vld [vmem:[%s88_s19 + $0x88] sm:$0xff]  }
  0x13   : > { %126 = vst [vmem:[%s84_s20 + $0x28] sm:$0xff] %v125_v5   ;;  %130 = vst [vmem:[%s84_s20 + $0x30] sm:$0xff] %v129_v6   ;;  %v145_v10 = vld [vmem:[%s88_s19 + $0x90] sm:$0xff]   ;;  %v149_v11 = vld [vmem:[%s88_s19 + $0x98] sm:$0xff]  }
  0x14   : > { %134 = vst [vmem:[%s84_s20 + $0x38] sm:$0xff] %v133_v7   ;;  %138 = vst [vmem:[%s84_s20 + $0x40] sm:$0xff] %v137_v8  }
  0x15   : > { %142 = vst [vmem:[%s84_s20 + $0x48] sm:$0xff] %v141_v9   ;;  %146 = vst [vmem:[%s84_s20 + $0x50] sm:$0xff] %v145_v10  }
  0x16   : > { %150 = vst [vmem:[%s84_s20 + $0x58] sm:$0xff] %v149_v11  }
  0x17 PF: > { %p949_p5 = scmp.ge.s32.totalorder %s1168_s8, 1  ;;  %p223_p6 = scmp.lt.s32.totalorder %s1168_s8, 3 }
  0x19   : > { %p224_p7 = pnand %p949_p5, %p223_p6 }
  0x1a   : > { %s230_s21 = sand.u32 (!%p224_p7), 1, %s1160_s6   ;;  %s950_s24 = sshll.u32 (!%p224_p7), %s942_s9, 2 }
  0x1b   : > { %227 = sbr.rel (%p224_p7) target bundleno = 769 (0x301), region = 61  ;;  %p252_p8 = scmp.lt.s32.totalorder (!%p224_p7), %s950_s24, 7 }
  0x1c   : > { %s1075_s22 = smul.u32 (!%p224_p7), 96, %s230_s21 }
  0x1e   : > { %s1225_s23 = scalar_lea.vmem (!%p224_p7), [#allocation2], %s1075_s22 }
  0x20   : > { %v1170_v12 = vmov 0.0   ;;  %vm1171_vm0 = vmmov 0   ;;  %vm295_vm1 = vcmask 261120   ;;  %v1102_v13 = vld [vmem:[%s1225_s23 + $0x20] sm:$0xff]   ;;  %v1103_v14 = vld [vmem:[%s1225_s23 + $0x28] sm:$0xff]   ;;  %v1106_v18 = vld [vmem:[%s1225_s23 + $0x30] sm:$0xff]   ;;  %v522_v25 = vlaneseq }
  0x21   : > { %1026 = vmatprep.subr.bf16.mxu0 %v1170_v12  ;;  %1032 = vmatprep.subr.bf16.mxu1 %v1170_v12  ;;  %v300_v15 = vsel %vm295_vm1, %v1102_v13, 0  ;;  %v357_v16 = vsel %vm295_vm1, %v1103_v14, 0  ;;  %v1104_v17 = vld [vmem:[%s1225_s23] sm:$0xff]   ;;  %v1107_v19 = vld [vmem:[%s1225_s23 + $0x38] sm:$0xff]   ;;  %v1105_v20 = vld [vmem:[%s1225_s23 + $0x8] sm:$0xff]   ;;  %v414_v21 = vsel %vm295_vm1, %v1106_v18, 0 }
  0x22   : > { %1028 = vmatprep.mubr.msk.bf16.mxu0 %vm1171_vm0, %v1170_v12  ;;  %1034 = vmatprep.mubr.msk.bf16.mxu1 %vm1171_vm0, %v1170_v12  ;;  %v471_v22 = vsel %vm295_vm1, %v1107_v19, 0  ;;  %v1108_v23 = vld [vmem:[%s1225_s23 + $0x10] sm:$0xff]   ;;  %v1109_v24 = vld [vmem:[%s1225_s23 + $0x18] sm:$0xff]   ;;  %v523_v26 = vshrl.u32 %v522_v25, 7  ;;  %v526_v27 = vand.u32 127, %v522_v25  ;;  %vm544_vm5 = vcmask 130048  }
  0x23   : > { %1027 = vmatpush3.bf16.xpose.msra.mxu0 %v300_v15  ;;  %1033 = vmatpush3.bf16.xpose.msra.mxu1 %v357_v16  ;;  %s1354_s24 = smov (!%p252_p8, %s950_s24), 7  ;;  %vm869_vm8 = vcmask 257024  }
  0x24   : > { %1038 = vmatprep.subr.bf16.mxu0 %v1170_v12  ;;  %1044 = vmatprep.subr.bf16.mxu1 %v1170_v12  ;;  %vm527_vm2 = vcmp.ge.s32.totalorder %v526_v27, 16  ;;  %vm528_vm3 = vcmp.gt.s32.totalorder %v526_v27, %v523_v26  ;;  %v524_v28 = vadd.s32 8, %v523_v26  ;;  %s1001_s25 = sshll.u32 %s1354_s24, 3 }
  0x25   : > { %vm1256_vm4 = vmor %vm527_vm2, %vm528_vm3  ;;  %s1316_s28 = scalar_lea.vmem %s1345_s1, %s1001_s25 }
  0x26   : > { %vm529_vm6 = vcmp.gt.s32.totalorder %v526_v27, %v524_v28 }
  0x27   : > { %vm1266_vm7 = vmor %vm527_vm2, %vm529_vm6 }
  0x2a   : > { %1029 = vmatmul.mubr.msk.bf16.vlgmr.msra.gmra.mxu0 %vm295_vm1, %v1104_v17  ;;  %1035 = vmatmul.mubr.msk.bf16.vlgmr.msra.gmra.mxu1 %vm295_vm1, %v1105_v20 }
  0x2b   : > { %1039 = vmatpush3.bf16.xpose.msra.mxu0 %v414_v21  ;;  %1045 = vmatpush3.bf16.xpose.msra.mxu1 %v471_v22 }
  0x2c   : > { %1040 = vmatprep.mubr.msk.bf16.mxu0 %vm1171_vm0, %v1170_v12  ;;  %1046 = vmatprep.mubr.msk.bf16.mxu1 %vm1171_vm0, %v1170_v12 }
  0x2d   : > { %1050 = vmatprep.subr.bf16.mxu0 %v1170_v12  ;;  %1056 = vmatprep.subr.bf16.mxu1 %v1170_v12 }
  0x32   : > { %1041 = vmatmul.mubr.msk.bf16.vlgmr.msra.gmra.mxu0 %vm295_vm1, %v1108_v23  ;;  %1047 = vmatmul.mubr.msk.bf16.vlgmr.msra.gmra.mxu1 %vm295_vm1, %v1109_v24 }
  0x33   : > { %1052 = vmatprep.mubr.msk.bf16.mxu0 %vm1171_vm0, %v1170_v12  ;;  %1058 = vmatprep.mubr.msk.bf16.mxu1 %vm1171_vm0, %v1170_v12 }
  0xea   : > { %v336_v29 = vpop.f32.mrf.mxu0  ;;  %v393_v32 = vpop.f32.mrf.mxu1 }
  0xeb   : > { %v514_v31 = vmul.f32 0.17677669, %v336_v29  ;;  %v516_v33 = vmul.f32 0.17677669, %v393_v32 }
  0xec   : > { %v1030_v34 = vpop.f32.mrf.mxu0  ;;  %v1036_v35 = vpop.f32.mrf.mxu1 }
  0xed   : > { %v536_v36 = vsel %vm1256_vm4, -2.3819763e+38, %v514_v31  ;;  %v538_v38 = vsel %vm1256_vm4, -2.3819763e+38, %v516_v33 }
  0xee   : > { %v339_v37 = vpop.f32.mrf.mxu0  ;;  %v545_v39 = vsel %vm544_vm5, %v536_v36, -inf  ;;  %v396_v42 = vpop.f32.mrf.mxu1  ;;  %v551_v43 = vsel %vm544_vm5, %v538_v38, -inf }
  0xef   : > { %v515_v41 = vmul.f32 0.17677669, %v339_v37  ;;  %546 = vmax.xlane.f32.xlu0 %v545_v39  ;;  %v517_v44 = vmul.f32 0.17677669, %v396_v42  ;;  %552 = vmax.xlane.f32.xlu1 %v551_v43 }
  0xf0   : > { %v1031_v45 = vpop.f32.mrf.mxu0  ;;  %v1037_v46 = vpop.f32.mrf.mxu1 }
  0xf1   : > { %v537_v47 = vsel %vm1266_vm7, -2.3819763e+38, %v515_v41  ;;  %v539_v49 = vsel %vm1266_vm7, -2.3819763e+38, %v517_v44 }
  0xf2   : > { %v450_v48 = vpop.f32.mrf.mxu0  ;;  %v548_v50 = vsel %vm544_vm5, %v537_v47, -inf  ;;  %v507_v52 = vpop.f32.mrf.mxu1  ;;  %v554_v53 = vsel %vm544_vm5, %v539_v49, -inf }
  0xf3   : > { %v518_v51 = vmul.f32 0.17677669, %v450_v48  ;;  %549 = vmax.xlane.f32.xlu0 %v548_v50  ;;  %v520_v54 = vmul.f32 0.17677669, %v507_v52  ;;  %555 = vmax.xlane.f32.xlu1 %v554_v53  ;;  %v1110_v48 = vld [vmem:[%s1225_s23 + $0x40] sm:$0xff]  }
  0xf4   : > { %v1042_v55 = vpop.f32.mrf.mxu0  ;;  %v1048_v56 = vpop.f32.mrf.mxu1  ;;  %1051 = vmatpush3.bf16.msra.mxu0 %v1110_v48 }
  0xf5   : > { %v540_v57 = vsel %vm1256_vm4, -2.3819763e+38, %v518_v51  ;;  %v542_v60 = vsel %vm1256_vm4, -2.3819763e+38, %v520_v54  ;;  %1062 = vmatprep.subr.bf16.mxu0 %v1170_v12 }
  0xf6   : > { %v453_v58 = vpop.f32.mrf.mxu0  ;;  %v557_v59 = vsel %vm544_vm5, %v540_v57, -inf  ;;  %v510_v62 = vpop.f32.mrf.mxu1  ;;  %v563_v1 = vsel %vm544_vm5, %v542_v60, -inf }
  0xf7   : > { %v519_v61 = vmul.f32 0.17677669, %v453_v58  ;;  %558 = vmax.xlane.f32.xlu0 %v557_v59  ;;  %v521_v63 = vmul.f32 0.17677669, %v510_v62 }
  0xf8   : > { %v1043_v0 = vpop.f32.mrf.mxu0  ;;  %v1049_v2 = vpop.f32.mrf.mxu1 }
  0xf9   : > { %v541_v3 = vsel %vm1266_vm7, -2.3819763e+38, %v519_v61  ;;  %v543_v5 = vsel %vm1266_vm7, -2.3819763e+38, %v521_v63  ;;  %v1112_v63 = vld [vmem:[%s1225_s23 + $0x50] sm:$0xff]  }
  0xfa   : > { %v560_v4 = vsel %vm544_vm5, %v541_v3, -inf  ;;  %v566_v6 = vsel %vm544_vm5, %v543_v5, -inf }
  0xfb   : > { %564 = vmax.xlane.f32.xlu0 %v563_v1  ;;  %561 = vmax.xlane.f32.xlu1 %v560_v4 }
  0xff   : > { %567 = vmax.xlane.f32.xlu1 %v566_v6 }
 0x178   : > { %v547_v7 = vpop.xlane.xlu0 %546  ;;  %v553_v8 = vpop.xlane.xlu1 %552 }
 0x179   : > { %v569_v9 = vsub.f32 %v536_v36, %v547_v7  ;;  %v571_v10 = vsub.f32 %v538_v38, %v553_v8 }
 0x17b   : > { %v577_v11 = vmul.f32 1.442695, %v569_v9  ;;  %v581_v13 = vmul.f32 1.442695, %v571_v10 }
 0x17c   : > { %v550_v14 = vpop.xlane.xlu0 %549  ;;  %v556_v15 = vpop.xlane.xlu1 %555 }
 0x17d   : > { %1114 = vpow2.f32 %v577_v11  ;;  %v570_v16 = vsub.f32 %v537_v47, %v550_v14  ;;  %v572_v17 = vsub.f32 %v539_v49, %v556_v15  ;;  %v1111_v49 = vld [vmem:[%s1225_s23 + $0x48] sm:$0xff]  }
 0x17e   : > { %1116 = vpow2.f32 %v581_v13  ;;  %1057 = vmatpush3.bf16.msra.mxu1 %v1111_v49 }
 0x17f   : > { %v579_v18 = vmul.f32 1.442695, %v570_v16  ;;  %v583_v19 = vmul.f32 1.442695, %v572_v17  ;;  %1068 = vmatprep.subr.bf16.mxu1 %v1170_v12 }
 0x180   : > { %v559_v20 = vpop.xlane.xlu0 %558 }
 0x181   : > { %1118 = vpow2.f32 %v579_v18  ;;  %v573_v21 = vsub.f32 %v540_v57, %v559_v20 }
 0x182   : > { %1120 = vpow2.f32 %v583_v19 }
 0x183   : > { %v585_v22 = vmul.f32 1.442695, %v573_v21 }
 0x184   : > { %v565_v23 = vpop.xlane.xlu0 %564  ;;  %v562_v24 = vpop.xlane.xlu1 %561 }
 0x185   : > { %1122 = vpow2.f32 %v585_v22  ;;  %v575_v25 = vsub.f32 %v542_v60, %v565_v23  ;;  %v574_v26 = vsub.f32 %v541_v3, %v562_v24 }
 0x187   : > { %v589_v27 = vmul.f32 1.442695, %v575_v25  ;;  %v587_v28 = vmul.f32 1.442695, %v574_v26 }
 0x188   : > { %v568_v29 = vpop.xlane.xlu1 %567 }
 0x189   : > { %1124 = vpow2.f32 %v589_v27  ;;  %v576_v30 = vsub.f32 %v543_v5, %v568_v29  ;;  %v1113_v5 = vld [vmem:[%s1225_s23 + $0x58] sm:$0xff]  }
 0x18a   : > { %v1115_v31 = vpop.eup %1114  ;;  %1126 = vpow2.f32 %v587_v28 }
 0x18b   : > { %v591_v32 = vmul.f32 1.442695, %v576_v30  ;;  %v593_v33 = vsel %vm544_vm5, %v1115_v31, 0.0  ;;  %v1117_v34 = vpop.eup %1116 }
 0x18c   : > { %594 = vadd.xlane.f32.xlu0 %v593_v33  ;;  %v599_v36 = vsel %vm544_vm5, %v1117_v34, 0.0 }
 0x18d   : > { %1128 = vpow2.f32 %v591_v32 }
 0x18e   : > { %v1119_v35 = vpop.eup %1118 }
 0x18f   : > { %v596_v37 = vsel %vm544_vm5, %v1119_v35, 0.0  ;;  %v1121_v38 = vpop.eup %1120 }
 0x190   : > { %600 = vadd.xlane.f32.xlu0 %v599_v36  ;;  %597 = vadd.xlane.f32.xlu1 %v596_v37  ;;  %v602_v41 = vsel %vm544_vm5, %v1121_v38, 0.0 }
 0x192   : > { %v1123_v39 = vpop.eup %1122 }
 0x193   : > { %v605_v40 = vsel %vm544_vm5, %v1123_v39, 0.0 }
 0x194   : > { %606 = vadd.xlane.f32.xlu0 %v605_v40  ;;  %603 = vadd.xlane.f32.xlu1 %v602_v41 }
 0x196   : > { %v1125_v42 = vpop.eup %1124 }
 0x197   : > { %v1127_v43 = vpop.eup %1126  ;;  %v611_v44 = vsel %vm544_vm5, %v1125_v42, 0.0 }
 0x198   : > { %612 = vadd.xlane.f32.xlu0 %v611_v44  ;;  %v608_v45 = vsel %vm544_vm5, %v1127_v43, 0.0 }
 0x199   : > { %609 = vadd.xlane.f32.xlu1 %v608_v45 }
 0x19a   : > { %v1129_v46 = vpop.eup %1128 }
 0x19b   : > { %v614_v47 = vsel %vm544_vm5, %v1129_v46, 0.0 }
 0x19d   : > { %615 = vadd.xlane.f32.xlu1 %v614_v47 }
 0x215   : > { %v595_v50 = vpop.xlane.xlu0 %594 }
 0x216   : > { %1130 = vrcp.f32 %v595_v50 }
 0x219   : > { %v601_v51 = vpop.xlane.xlu0 %600  ;;  %v598_v52 = vpop.xlane.xlu1 %597 }
 0x21a   : > { %1132 = vrcp.f32 %v598_v52 }
 0x21b   : > { %1134 = vrcp.f32 %v601_v51 }
 0x21d   : > { %v607_v53 = vpop.xlane.xlu0 %606  ;;  %v604_v54 = vpop.xlane.xlu1 %603 }
 0x21e   : > { %1136 = vrcp.f32 %v604_v54 }
 0x21f   : > { %1138 = vrcp.f32 %v607_v53 }
 0x221   : > { %v613_v55 = vpop.xlane.xlu0 %612 }
 0x222   : > { %v610_v56 = vpop.xlane.xlu1 %609 }
 0x223   : > { %1140 = vrcp.f32 %v610_v56  ;;  %v1131_v57 = vpop.eup %1130 }
 0x224   : > { %1142 = vrcp.f32 %v613_v55  ;;  %v625_v60 = vmul.f32 %v1131_v57, %v1115_v31 }
 0x226   : > { %v616_v58 = vpop.xlane.xlu1 %615 }
 0x227   : > { %1144 = vrcp.f32 %v616_v58  ;;  %v1133_v59 = vpop.eup %1132 }
 0x228   : > { %v626_v61 = vmul.f32 %v1133_v59, %v1119_v35  ;;  %v1135_v62 = vpop.eup %1134 }
 0x229   : > { %v627_v2 = vmul.f32 %v1135_v62, %v1117_v34 }
 0x22a   : > { %v633_v0 = vpack.c.bf16 %v626_v61, %v625_v60 }
 0x22b   : > { %v1137_v1 = vpop.eup %1136 }
 0x22c   : > { %1053 = vmatmul.mubr.msk.bf16.vlgmr.msra.gmra.mxu0 %vm544_vm5, %v633_v0  ;;  %v628_v3 = vmul.f32 %v1137_v1, %v1121_v38  ;;  %v1139_v4 = vpop.eup %1138 }
 0x22d   : > { %1063 = vmatpush3.bf16.msra.mxu0 %v1112_v63  ;;  %1064 = vmatprep.mubr.msk.bf16.mxu0 %vm1171_vm0, %v1170_v12  ;;  %v629_v8 = vmul.f32 %v1139_v4, %v1123_v39 }
 0x22e   : > { %v634_v6 = vpack.c.bf16 %v628_v3, %v627_v2 }
 0x230   : > { %v1141_v7 = vpop.eup %1140  ;;  %1059 = vmatmul.mubr.msk.bf16.vlgmr.msra.gmra.mxu1 %vm544_vm5, %v634_v6 }
 0x231   : > { %v630_v9 = vmul.f32 %v1141_v7, %v1127_v43  ;;  %v1143_v10 = vpop.eup %1142  ;;  %1069 = vmatpush3.bf16.msra.mxu1 %v1113_v5  ;;  %1070 = vmatprep.mubr.msk.bf16.mxu1 %vm1171_vm0, %v1170_v12 }
 0x232   : > { %v631_v14 = vmul.f32 %v1143_v10, %v1125_v42 }
 0x233   : > { %v635_v11 = vpack.c.bf16 %v630_v9, %v629_v8 }
 0x234   : > { %v1145_v13 = vpop.eup %1144 }
 0x235   : > { %v632_v15 = vmul.f32 %v1145_v13, %v1129_v46  ;;  %1065 = vmatmul.mubr.msk.bf16.vlgmr.msra.gmra.mxu0 %vm544_vm5, %v635_v11 }
 0x237   : > { %v636_v16 = vpack.c.bf16 %v632_v15, %v631_v14 }
 0x239   : > { %1071 = vmatmul.mubr.msk.bf16.vlgmr.msra.gmra.mxu1 %vm544_vm5, %v636_v16 }
 0x2ec   : > { %v680_v12 = vpop.f32.mrf.mxu0 }
 0x2ed   : > { %v1002_v17 = vpack.c.bf16 %v680_v12, %v680_v12 }
 0x2ee   : > { %v1054_v18 = vpop.f32.mrf.mxu0 }
 0x2ef   : > { %870 = vst.msk [vmem:[%s1316_s28] sm:$0xf] %vm869_vm8, %v1002_v17 }
 0x2f0   : > { %v683_v19 = vpop.f32.mrf.mxu0  ;;  %v730_v20 = vpop.f32.mrf.mxu1 }
 0x2f1   : > { %v1003_v21 = vpack.c.bf16 %v683_v19, %v683_v19  ;;  %v1004_v22 = vpack.c.bf16 %v730_v20, %v730_v20 }
 0x2f2   : > { %v1055_v23 = vpop.f32.mrf.mxu0  ;;  %v1060_v24 = vpop.f32.mrf.mxu1 }
 0x2f3   : > { %871 = vst.msk [vmem:[%s1316_s28 + $0x4] sm:$0xf] %vm869_vm8, %v1003_v21  ;;  %872 = vst.msk [vmem:[%s1316_s28 + $0x8] sm:$0xf] %vm869_vm8, %v1004_v22 }
 0x2f4   : > { %v733_v25 = vpop.f32.mrf.mxu1 }
 0x2f5   : > { %v780_v26 = vpop.f32.mrf.mxu0  ;;  %v1005_v27 = vpack.c.bf16 %v733_v25, %v733_v25 }
 0x2f6   : > { %v1006_v28 = vpack.c.bf16 %v780_v26, %v780_v26  ;;  %v1061_v29 = vpop.f32.mrf.mxu1 }
 0x2f7   : > { %v1066_v30 = vpop.f32.mrf.mxu0  ;;  %873 = vst.msk [vmem:[%s1316_s28 + $0xc] sm:$0xf] %vm869_vm8, %v1005_v27 }
 0x2f8   : > { %874 = vst.msk [vmem:[%s1316_s28 + $0x10] sm:$0xf] %vm869_vm8, %v1006_v28 }
 0x2f9   : > { %v783_v31 = vpop.f32.mrf.mxu0  ;;  %v830_v32 = vpop.f32.mrf.mxu1 }
 0x2fa   : > { %v1007_v33 = vpack.c.bf16 %v783_v31, %v783_v31  ;;  %v1008_v34 = vpack.c.bf16 %v830_v32, %v830_v32 }
 0x2fb   : > { %v1067_v35 = vpop.f32.mrf.mxu0  ;;  %v1072_v36 = vpop.f32.mrf.mxu1 }
 0x2fc   : > { %875 = vst.msk [vmem:[%s1316_s28 + $0x14] sm:$0xf] %vm869_vm8, %v1007_v33  ;;  %876 = vst.msk [vmem:[%s1316_s28 + $0x18] sm:$0xf] %vm869_vm8, %v1008_v34 }
 0x2fd   : > { %v833_v37 = vpop.f32.mrf.mxu1 }
 0x2fe   : > { %v1009_v38 = vpack.c.bf16 %v833_v37, %v833_v37 }
 0x2ff   : > { %v1073_v39 = vpop.f32.mrf.mxu1 }
 0x300   : > { %877 = vst.msk [vmem:[%s1316_s28 + $0x1c] sm:$0xf] %vm869_vm8, %v1009_v38 }
 0x301 PF: > { %p8_p9 = scmp.ge.s32.totalorder %s1199_s10, 4   ;;  %s1350_s6 = smov %s1164_s7 }
 0x302   : > { %s1351_s7 = smov %s1208_s13  ;;  %s1352_s8 = smov %s1199_s10 }
 0x303   :  { %10 = sbr.rel (!%p8_p9) target bundleno = 2 (0x2), region = 102 }

// kernel: text_transformer_forward.12
= control target key start
LH: loop header
LB: loop body
LE: loop exit
PB: predicated region body
PF: predicated region fallthrough
CT: control target
= control target key end

     0   :  { %s370_s1 = inlined_call_operand.vmem [shape: bf16[128,128], index: 1, kind: input, shape index: {}]   ;;  %s371_s0 = inlined_call_operand.vmem [shape: bf16[32,128], index: 0, kind: input, shape index: {}]   ;;  %s372_s2 = inlined_call_operand.vmem [shape: f32[1,128], index: 2, kind: input, shape index: {}]   ;;  %s373_s3 = inlined_call_operand.vmem [shape: bf16[32,128], index: 3, kind: input, shape index: {}]   ;;  %s374_s4 = inlined_call_operand.vmem [shape: bf16[32,128], index: 4, kind: output, shape index: {}]  }
   0x1   :  { %v290_v0 = vld [vmem:[%s370_s1 + $0x38] sm:$0xff]   ;;  %v291_v1 = vld [vmem:[%s370_s1 + $0x30] sm:$0xff]   ;;  %v292_v2 = vld [vmem:[%s370_s1 + $0x28] sm:$0xff]  }
   0x2   :  { %270 = vmatprep.subr.bf16.mxu0 %v290_v0  ;;  %v293_v3 = vld [vmem:[%s370_s1 + $0x20] sm:$0xff]   ;;  %v294_v5 = vld [vmem:[%s370_s1 + $0x18] sm:$0xff]   ;;  %v295_v6 = vld [vmem:[%s370_s1 + $0x10] sm:$0xff]  }
   0x3   :  { %271 = vmatpush3.bf16.msra.mxu0 %v290_v0  ;;  %v298_v4 = vld [vmem:[%s371_s0] sm:$0xff]   ;;  %v296_v7 = vld [vmem:[%s370_s1 + $0x8] sm:$0xff]  }
   0x4   :  { %272 = vmatprep.subr.bf16.mxu0 %v291_v1  ;;  %286 = vmatprep.mubr.bf16.mxu0 %v298_v4  ;;  %v297_v8 = vld [vmem:[%s370_s1] sm:$0xff]   ;;  %v299_v9 = vld [vmem:[%s371_s0 + $0x8] sm:$0xff]  }
   0x5   :  { %v231_v11 = vld [vmem:[%s372_s2] ss:$0 sm:$0xff]  ;;  %v258_v12 = vld [vmem:[%s373_s3 + $0x8] sm:$0xff]  }
   0x6   :  { %v241_v14 = vld [vmem:[%s373_s3] sm:$0xff]   ;;  %v246_v16 = vunpack.c.l.bf16 %v258_v12  ;;  %v247_v17 = vunpack.c.h.bf16 %v258_v12 }
   0x7   :  { %273 = vmatpush3.bf16.msra.mxu0 %v291_v1  ;;  %v242_v20 = vunpack.c.l.bf16 %v241_v14  ;;  %v243_v22 = vunpack.c.h.bf16 %v241_v14 }
   0x8   :  { %274 = vmatprep.subr.bf16.mxu0 %v292_v2 }
   0xb   :  { %275 = vmatpush3.bf16.msra.mxu0 %v292_v2 }
   0xc   :  { %276 = vmatprep.subr.bf16.mxu0 %v293_v3 }
   0xf   :  { %277 = vmatpush3.bf16.msra.mxu0 %v293_v3 }
  0x10   :  { %278 = vmatprep.subr.bf16.mxu0 %v294_v5 }
  0x13   :  { %279 = vmatpush3.bf16.msra.mxu0 %v294_v5 }
  0x14   :  { %280 = vmatprep.subr.bf16.mxu0 %v295_v6 }
  0x17   :  { %281 = vmatpush3.bf16.msra.mxu0 %v295_v6 }
  0x18   :  { %282 = vmatprep.subr.bf16.mxu0 %v296_v7 }
  0x1b   :  { %283 = vmatpush3.bf16.msra.mxu0 %v296_v7 }
  0x1c   :  { %284 = vmatprep.subr.bf16.mxu0 %v297_v8 }
  0x1f   :  { %285 = vmatpush3.bf16.msra.mxu0 %v297_v8 }
  0x22   :  { %287 = vmatmul.mubr.bf16.vlgmr.msra.gmra.mxu0 %v299_v9 }
  0xe2   :  { %v288_v10 = vpop.f32.mrf.mxu0 }
  0xe3   :  { %v183_v15 = vadd.f32 %v288_v10, %v231_v11 }
  0xe4   :  { %v144_v13 = vpop.f32.mrf.mxu0 }
  0xe5   :  { %v181_v19 = vadd.f32 %v231_v11, %v144_v13  ;;  %v195_v24 = vadd.f32 %v246_v16, %v183_v15 }
  0xe6   :  { %v289_v18 = vpop.f32.mrf.mxu0 }
  0xe7   :  { %v184_v21 = vadd.f32 %v289_v18, %v231_v11  ;;  %v193_v27 = vadd.f32 %v242_v20, %v181_v19 }
  0xe8   :  { %v147_v23 = vpop.f32.mrf.mxu0 }
  0xe9   :  { %v196_v25 = vadd.f32 %v247_v17, %v184_v21  ;;  %v182_v26 = vadd.f32 %v231_v11, %v147_v23 }
  0xeb   :  { %v256_v28 = vpack.c.bf16 %v196_v25, %v195_v24  ;;  %v194_v29 = vadd.f32 %v243_v22, %v182_v26 }
  0xed   :  { %259 = vst [vmem:[%s374_s4 + $0x8] sm:$0xff] %v256_v28   ;;  %v251_v30 = vpack.c.bf16 %v194_v29, %v193_v27 }
  0xef   :  { %252 = vst [vmem:[%s374_s4] sm:$0xff] %v251_v30  }

// kernel: text_transformer_forward.14
= control target key start
LH: loop header
LB: loop body
LE: loop exit
PB: predicated region body
PF: predicated region fallthrough
CT: control target
= control target key end

     0   :  { %s823_s1 = inlined_call_operand.vmem [shape: bf16[512,128], index: 1, kind: input, shape index: {}]   ;;  %s824_s0 = inlined_call_operand.vmem [shape: bf16[32,512], index: 0, kind: input, shape index: {}]   ;;  %s825_s2 = inlined_call_operand.vmem [shape: f32[1,128], index: 2, kind: input, shape index: {}]   ;;  %s826_s3 = inlined_call_operand.vmem [shape: bf16[32,128], index: 3, kind: input, shape index: {}]   ;;  %s827_s4 = inlined_call_operand.vmem [shape: bf16[32,128], index: 4, kind: output, shape index: {}]  }
   0x1   :  { %v619_v0 = vld [vmem:[%s823_s1 + $0x78] sm:$0xff]   ;;  %v623_v4 = vld [vmem:[%s823_s1 + $0x70] sm:$0xff]   ;;  %v627_v8 = vld [vmem:[%s823_s1 + $0x68] sm:$0xff]  }
   0x2   :  { %v620_v1 = vld [vmem:[%s823_s1 + $0xf8] sm:$0xff]   ;;  %563 = vmatprep.subr.bf16.mxu0 %v619_v0  ;;  %v624_v5 = vld [vmem:[%s823_s1 + $0xf0] sm:$0xff]   ;;  %v628_v9 = vld [vmem:[%s823_s1 + $0xe8] sm:$0xff]  }
   0x3   :  { %v621_v2 = vld [vmem:[%s823_s1 + $0x38] sm:$0xff]   ;;  %591 = vmatprep.subr.bf16.mxu1 %v620_v1  ;;  %v625_v6 = vld [vmem:[%s823_s1 + $0x30] sm:$0xff]   ;;  %v629_v10 = vld [vmem:[%s823_s1 + $0x28] sm:$0xff]  }
   0x4   :  { %v622_v3 = vld [vmem:[%s823_s1 + $0xb8] sm:$0xff]   ;;  %564 = vmatpush3.bf16.msra.mxu0 %v621_v2  ;;  %v626_v7 = vld [vmem:[%s823_s1 + $0xb0] sm:$0xff]   ;;  %v630_v11 = vld [vmem:[%s823_s1 + $0xa8] sm:$0xff]  }
   0x5   :  { %592 = vmatpush3.bf16.msra.mxu1 %v622_v3  ;;  %565 = vmatprep.subr.bf16.mxu0 %v623_v4  ;;  %v631_v12 = vld [vmem:[%s823_s1 + $0x60] sm:$0xff]   ;;  %v635_v16 = vld [vmem:[%s823_s1 + $0x58] sm:$0xff]   ;;  %v639_v20 = vld [vmem:[%s823_s1 + $0x50] sm:$0xff]  }
   0x6   :  { %593 = vmatprep.subr.bf16.mxu1 %v624_v5  ;;  %v632_v13 = vld [vmem:[%s823_s1 + $0xe0] sm:$0xff]   ;;  %v636_v17 = vld [vmem:[%s823_s1 + $0xd8] sm:$0xff]   ;;  %v640_v21 = vld [vmem:[%s823_s1 + $0xd0] sm:$0xff]  }
   0x7   :  { %v633_v14 = vld [vmem:[%s823_s1 + $0x20] sm:$0xff]   ;;  %v637_v18 = vld [vmem:[%s823_s1 + $0x18] sm:$0xff]   ;;  %v641_v22 = vld [vmem:[%s823_s1 + $0x10] sm:$0xff]  }
   0x8   :  { %566 = vmatpush3.bf16.msra.mxu0 %v625_v6  ;;  %v634_v15 = vld [vmem:[%s823_s1 + $0xa0] sm:$0xff]   ;;  %v638_v19 = vld [vmem:[%s823_s1 + $0x98] sm:$0xff]   ;;  %v642_v23 = vld [vmem:[%s823_s1 + $0x90] sm:$0xff]  }
   0x9   :  { %594 = vmatpush3.bf16.msra.mxu1 %v626_v7  ;;  %567 = vmatprep.subr.bf16.mxu0 %v627_v8  ;;  %v643_v24 = vld [vmem:[%s823_s1 + $0x48] sm:$0xff]   ;;  %v647_v28 = vld [vmem:[%s823_s1 + $0x40] sm:$0xff]  }
   0xa   :  { %595 = vmatprep.subr.bf16.mxu1 %v628_v9  ;;  %v644_v25 = vld [vmem:[%s823_s1 + $0xc8] sm:$0xff]   ;;  %v648_v29 = vld [vmem:[%s823_s1 + $0xc0] sm:$0xff]  }
   0xb   :  { %v645_v26 = vld [vmem:[%s823_s1 + $0x8] sm:$0xff]   ;;  %v649_v30 = vld [vmem:[%s823_s1] sm:$0xff]  }
   0xc   :  { %568 = vmatpush3.bf16.msra.mxu0 %v629_v10  ;;  %v646_v27 = vld [vmem:[%s823_s1 + $0x88] sm:$0xff]   ;;  %v650_v31 = vld [vmem:[%s823_s1 + $0x80] sm:$0xff]  }
   0xd   :  { %596 = vmatpush3.bf16.msra.mxu1 %v630_v11  ;;  %569 = vmatprep.subr.bf16.mxu0 %v631_v12  ;;  %v651_v32 = vld [vmem:[%s824_s0] ss:$16 sps:$4 sm:$0xff]   ;;  %v653_v33 = vld [vmem:[%s824_s0 + $0x4] ss:$16 sps:$4 sm:$0xff]   ;;  %v654_v34 = vld [vmem:[%s824_s0 + $0x8] ss:$16 sps:$4 sm:$0xff]  }
   0xe   :  { %597 = vmatprep.subr.bf16.mxu1 %v632_v13  ;;  %v656_v35 = vld [vmem:[%s824_s0 + $0xc] ss:$16 sps:$4 sm:$0xff]   ;;  %366 = vmatprep.mubr.bf16.mxu0 %v653_v33  ;;  %v657_v36 = vld [vmem:[%s824_s0 + $0x24] ss:$16 sps:$4 sm:$0xff]   ;;  %v661_v38 = vld [vmem:[%s824_s0 + $0x20] ss:$16 sps:$4 sm:$0xff]  }
   0xf   :  { %415 = vmatprep.mubr.bf16.mxu1 %v656_v35  ;;  %v659_v37 = vld [vmem:[%s824_s0 + $0x2c] ss:$16 sps:$4 sm:$0xff]   ;;  %v662_v39 = vld [vmem:[%s824_s0 + $0x28] ss:$16 sps:$4 sm:$0xff]   ;;  %v534_v50 = vld [vmem:[%s825_s2] ss:$0 sm:$0xff] }
  0x10   :  { %570 = vmatpush3.bf16.msra.mxu0 %v633_v14  ;;  %v544_v51 = vld [vmem:[%s826_s3] sm:$0xff]   ;;  %v561_v8 = vld [vmem:[%s826_s3 + $0x8] sm:$0xff]  }
  0x11   :  { %598 = vmatpush3.bf16.msra.mxu1 %v634_v15  ;;  %571 = vmatprep.subr.bf16.mxu0 %v635_v16  ;;  %v545_v58 = vunpack.c.l.bf16 %v544_v51  ;;  %v546_v60 = vunpack.c.h.bf16 %v544_v51  ;;  %v549_v14 = vunpack.c.l.bf16 %v561_v8  ;;  %v550_v16 = vunpack.c.h.bf16 %v561_v8 }
  0x12   :  { %599 = vmatprep.subr.bf16.mxu1 %v636_v17 }
  0x14   :  { %572 = vmatpush3.bf16.msra.mxu0 %v637_v18 }
  0x15   :  { %600 = vmatpush3.bf16.msra.mxu1 %v638_v19  ;;  %573 = vmatprep.subr.bf16.mxu0 %v639_v20 }
  0x16   :  { %601 = vmatprep.subr.bf16.mxu1 %v640_v21 }
  0x18   :  { %574 = vmatpush3.bf16.msra.mxu0 %v641_v22 }
  0x19   :  { %602 = vmatpush3.bf16.msra.mxu1 %v642_v23  ;;  %575 = vmatprep.subr.bf16.mxu0 %v643_v24 }
  0x1a   :  { %603 = vmatprep.subr.bf16.mxu1 %v644_v25 }
  0x1c   :  { %576 = vmatpush3.bf16.msra.mxu0 %v645_v26 }
  0x1d   :  { %604 = vmatpush3.bf16.msra.mxu1 %v646_v27  ;;  %577 = vmatprep.subr.bf16.mxu0 %v647_v28 }
  0x1e   :  { %605 = vmatprep.subr.bf16.mxu1 %v648_v29 }
  0x20   :  { %578 = vmatpush3.bf16.msra.mxu0 %v649_v30 }
  0x21   :  { %606 = vmatpush3.bf16.msra.mxu1 %v650_v31 }
  0x23   :  { %367 = vmatmul.mubr.bf16.vlgmr.msra.gmra.mxu0 %v651_v32 }
  0x24   :  { %416 = vmatmul.mubr.bf16.vlgmr.msra.gmra.mxu1 %v654_v34  ;;  %374 = vmatprep.mubr.bf16.mxu0 %v657_v36 }
  0x25   :  { %423 = vmatprep.mubr.bf16.mxu1 %v659_v37 }
  0x2b   :  { %375 = vmatmul.mubr.bf16.gmra.mxu0 %v661_v38 }
  0x2c   :  { %424 = vmatmul.mubr.bf16.gmra.mxu1 %v662_v39 }
  0xe3   :  { %v579_v40 = vpop.f32.mrf.mxu0 }
  0xe4   :  { %v607_v41 = vpop.f32.mrf.mxu1 }
  0xe5   :  { %v580_v42 = vpop.f32.mrf.mxu0 }
  0xe6   :  { %v581_v43 = vadd.f32 %v580_v42, %v579_v40  ;;  %v608_v44 = vpop.f32.mrf.mxu1 }
  0xe7   :  { %v609_v45 = vadd.f32 %v608_v44, %v607_v41  ;;  %v582_v46 = vpop.f32.mrf.mxu0 }
  0xe8   :  { %v610_v47 = vpop.f32.mrf.mxu1 }
  0xe9   :  { %v418_v48 = vadd.f32 %v609_v45, %v581_v43  ;;  %v583_v49 = vpop.f32.mrf.mxu0 }
  0xea   :  { %v584_v52 = vadd.f32 %v583_v49, %v582_v46  ;;  %v611_v53 = vpop.f32.mrf.mxu1 }
  0xeb   :  { %v612_v54 = vadd.f32 %v611_v53, %v610_v47  ;;  %v585_v55 = vpop.f32.mrf.mxu0  ;;  %v454_v57 = vadd.f32 %v534_v50, %v418_v48 }
  0xec   :  { %v613_v56 = vpop.f32.mrf.mxu1 }
  0xed   :  { %v421_v59 = vadd.f32 %v612_v54, %v584_v52  ;;  %v586_v61 = vpop.f32.mrf.mxu0  ;;  %v466_v4 = vadd.f32 %v545_v58, %v454_v57 }
  0xee   :  { %v587_v62 = vadd.f32 %v586_v61, %v585_v55  ;;  %v614_v63 = vpop.f32.mrf.mxu1 }
  0xef   :  { %v455_v0 = vadd.f32 %v534_v50, %v421_v59  ;;  %v615_v1 = vadd.f32 %v614_v63, %v613_v56  ;;  %v588_v2 = vpop.f32.mrf.mxu0 }
  0xf0   :  { %v616_v3 = vpop.f32.mrf.mxu1 }
  0xf1   :  { %v467_v5 = vadd.f32 %v546_v60, %v455_v0  ;;  %v426_v6 = vadd.f32 %v615_v1, %v587_v62  ;;  %v589_v7 = vpop.f32.mrf.mxu0 }
  0xf2   :  { %v590_v9 = vadd.f32 %v589_v7, %v588_v2  ;;  %v617_v10 = vpop.f32.mrf.mxu1 }
  0xf3   :  { %v554_v11 = vpack.c.bf16 %v467_v5, %v466_v4  ;;  %v618_v12 = vadd.f32 %v617_v10, %v616_v3  ;;  %v456_v13 = vadd.f32 %v534_v50, %v426_v6 }
  0xf5   :  { %555 = vst [vmem:[%s827_s4] sm:$0xff] %v554_v11   ;;  %v429_v15 = vadd.f32 %v618_v12, %v590_v9  ;;  %v468_v18 = vadd.f32 %v549_v14, %v456_v13 }
  0xf7   :  { %v457_v17 = vadd.f32 %v534_v50, %v429_v15 }
  0xf9   :  { %v469_v19 = vadd.f32 %v550_v16, %v457_v17 }
  0xfb   :  { %v559_v20 = vpack.c.bf16 %v469_v19, %v468_v18 }
  0xfd   :  { %562 = vst [vmem:[%s827_s4 + $0x8] sm:$0xff] %v559_v20  }

// kernel: text_transformer_forward.13
= control target key start
LH: loop header
LB: loop body
LE: loop exit
PB: predicated region body
PF: predicated region fallthrough
CT: control target
= control target key end

     0   :  { %s1342_s18 = smov 0   ;;  %s1344_s19 = smov 0   ;;  %s1648_s0 = inlined_call_operand.vmem [shape: bf16[32,128], index: 0, kind: input, shape index: {}]   ;;  %s1649_s1 = inlined_call_operand.vmem [shape: bf16[128,512], index: 1, kind: input, shape index: {}]   ;;  %s1650_s2 = inlined_call_operand.vmem [shape: f32[1,512], index: 2, kind: input, shape index: {}]   ;;  %s1651_s3 = inlined_call_operand.vmem [shape: f32[1,128], index: 3, kind: input, shape index: {}]   ;;  %s1652_s4 = inlined_call_operand.vmem [shape: f32[1,128], index: 4, kind: input, shape index: {}]   ;;  %s1653_s5 = inlined_call_operand.vmem [shape: bf16[32,512], index: 5, kind: output, shape index: {}]  }
   0x1   :  { %s1346_s20 = smov 0   ;;  %s1348_s21 = smov 0  }
   0x2   :  { %s1350_s22 = smov 0  }
   0x3 LB: > { %s30_s23 = sadd.s32 1, %s1304_s21  ;;  %s1094_s24 = sadd.s32 4294967295, %s1308_s22   ;;  %s1308_s22 = sphi %s1350_s22, %s15_s22   ;;  %s1304_s21 = sphi %s1348_s21, %s1658_s21   ;;  %s1300_s20 = sphi %s1346_s20, %s1657_s20   ;;  %s1296_s19 = sphi %s1344_s19, %s1656_s19   ;;  %s1292_s18 = sphi %s1342_s18, %s1655_s18  }
   0x4   : > { %p32_p0 = scmp.ge.s32.totalorder %s30_s23, 2  ;;  %p78_p1 = scmp.ne.s32.totalorder %s1296_s19, %s1292_s18 }
   0x5   : > { %p79_p2 = scmp.eq.s32.totalorder %s1308_s22, 0  ;;  %p178_p4 = scmp.eq.s32.totalorder %s1094_s24, 1 }
   0x6   : > { %s1660_s23 = smov (%p32_p0, %s30_s23), 0  ;;  %s71_s26 = sadd.s32 1, %s1296_s19 }
   0x7   : > { %p80_p3 = por %p79_p2, %p78_p1  ;;  %s67_s25 = ssub.s32 %s1304_s21, %s1660_s23 }
   0x8   : > { %p69_p5 = scmp.eq.s32.totalorder %s67_s25, 0  ;;  %p1377_p6 = por %p178_p4, %p78_p1 }
   0x9   : > { %p1098_p7 = scmp.ge.s32.totalorder %s1308_s22, 2 }
   0xa   : > { %s1382_s28 = scalar_select %p69_p5, %s1296_s19, %s71_s26  }
   0xb   : > { %218 = sbr.rel (%p1098_p7) target bundleno = 28 (0x1c), region = 28 }
  0x10   : > { %221 = sbr.rel (!%p80_p3) target bundleno = 28 (0x1c), region = 32  ;;  %s223_s29 = sand.u32 (%p80_p3), 1, %s1296_s19  }
  0x11   : > { %s1133_s30 = sshll.u32 (%p80_p3), %s1304_s21, 3  ;;  %s1099_s6 = sshll.u32 (%p80_p3), %s223_s29, 7 }
  0x12   : > { %s1390_s9 = scalar_lea.vmem (%p80_p3), %s1649_s1, %s1133_s30  ;;  %s225_s10 = scalar_lea.vmem (%p80_p3), [#allocation3], %s1099_s6 }
  0x13   : > { %v290_v0 = vld [vmem:[%s1390_s9] sm:$0xff] (%p80_p3)  ;;  %v292_v1 = vld [vmem:[%s1390_s9 + $0x10] sm:$0xff] (%p80_p3) }
  0x14   : > { %v294_v2 = vld [vmem:[%s1390_s9 + $0x20] sm:$0xff] (%p80_p3)  ;;  %291 = vst [vmem:[%s225_s10] sm:$0xff] (%p80_p3), %v290_v0  ;;  %293 = vst [vmem:[%s225_s10 + $0x8] sm:$0xff] (%p80_p3), %v292_v1  ;;  %v296_v3 = vld [vmem:[%s1390_s9 + $0x30] sm:$0xff] (%p80_p3) }
  0x15   : > { %295 = vst [vmem:[%s225_s10 + $0x10] sm:$0xff] %v294_v2  ;;  %v298_v4 = vld [vmem:[%s1390_s9 + $0x40] sm:$0xff]  ;;  %v300_v5 = vld [vmem:[%s1390_s9 + $0x50] sm:$0xff]  ;;  %297 = vst [vmem:[%s225_s10 + $0x18] sm:$0xff] %v296_v3 }
  0x16   : > { %299 = vst [vmem:[%s225_s10 + $0x20] sm:$0xff] %v298_v4  ;;  %301 = vst [vmem:[%s225_s10 + $0x28] sm:$0xff] %v300_v5  ;;  %v302_v6 = vld [vmem:[%s1390_s9 + $0x60] sm:$0xff]  ;;  %v304_v7 = vld [vmem:[%s1390_s9 + $0x70] sm:$0xff] }
  0x17   : > { %v306_v8 = vld [vmem:[%s1390_s9 + $0x80] sm:$0xff]  ;;  %303 = vst [vmem:[%s225_s10 + $0x30] sm:$0xff] %v302_v6  ;;  %305 = vst [vmem:[%s225_s10 + $0x38] sm:$0xff] %v304_v7  ;;  %v308_v9 = vld [vmem:[%s1390_s9 + $0x90] sm:$0xff] }
  0x18   : > { %307 = vst [vmem:[%s225_s10 + $0x40] sm:$0xff] %v306_v8  ;;  %v310_v10 = vld [vmem:[%s1390_s9 + $0xa0] sm:$0xff]  ;;  %v312_v11 = vld [vmem:[%s1390_s9 + $0xb0] sm:$0xff]  ;;  %309 = vst [vmem:[%s225_s10 + $0x48] sm:$0xff] %v308_v9 }
  0x19   : > { %311 = vst [vmem:[%s225_s10 + $0x50] sm:$0xff] %v310_v10  ;;  %313 = vst [vmem:[%s225_s10 + $0x58] sm:$0xff] %v312_v11  ;;  %v314_v12 = vld [vmem:[%s1390_s9 + $0xc0] sm:$0xff]  ;;  %v316_v13 = vld [vmem:[%s1390_s9 + $0xd0] sm:$0xff] }
  0x1a   : > { %v318_v14 = vld [vmem:[%s1390_s9 + $0xe0] sm:$0xff]  ;;  %315 = vst [vmem:[%s225_s10 + $0x60] sm:$0xff] %v314_v12  ;;  %317 = vst [vmem:[%s225_s10 + $0x68] sm:$0xff] %v316_v13  ;;  %v320_v15 = vld [vmem:[%s1390_s9 + $0xf0] sm:$0xff] }
  0x1b   : > { %319 = vst [vmem:[%s225_s10 + $0x70] sm:$0xff] %v318_v14  ;;  %321 = vst [vmem:[%s225_s10 + $0x78] sm:$0xff] %v320_v15 }
  0x1c PF: > { %p1102_p8 = scmp.ge.s32.totalorder %s1308_s22, 1  ;;  %p334_p9 = scmp.lt.s32.totalorder %s1308_s22, 3 }
  0x1e   : > { %p335_p10 = pnand %p1102_p8, %p334_p9 }
  0x1f   : > { %s341_s15 = sand.u32 (!%p335_p10), 1, %s1292_s18   ;;  %s1105_s30 = sshll.u32 (!%p335_p10), %s1300_s20, 1 }
  0x20   : > { %338 = sbr.rel (%p335_p10) target bundleno = 626 (0x272), region = 74  ;;  %s1103_s16 = sshll.u32 (!%p335_p10), %s341_s15, 7 }
  0x21   : > { %s1419_s17 = scalar_lea.vmem (!%p335_p10), [#allocation3], %s1103_s16  ;;  %p391_p11 = scmp.lt.s32.totalorder (!%p335_p10), %s1105_s30, 3 }
  0x22   : > { %s1104_s9 = sshll.u32 (!%p335_p10), %s341_s15, 5 }
  0x23   : > { %s1602_s18 = scalar_lea.vmem (!%p335_p10), [#allocation4], %s1104_s9 }
  0x25   : > { %v1140_v16 = vld [vmem:[%s1648_s0] sm:$0xff]   ;;  %v1147_v17 = vld [vmem:[%s1648_s0 + $0x8] sm:$0xff]   ;;  %v1206_v22 = vld [vmem:[%s1419_s17 + $0x74] ss:$8 sps:$4 sm:$0xff]   ;;  %v1310_v49 = vmov 0   ;;  %s1662_s30 = smov (!%p391_p11, %s1105_s30), 3 }
  0x26   : > { %v1141_v18 = vunpack.c.l.bf16 %v1140_v16  ;;  %v1145_v19 = vunpack.c.l.bf16 %v1147_v17  ;;  %v1142_v20 = vunpack.c.h.bf16 %v1140_v16  ;;  %v1146_v21 = vunpack.c.h.bf16 %v1147_v17  ;;  %591 = vmatprep.subr.bf16.mxu0 %v1206_v22  ;;  %1148 = vmatprep.subr.bf16.mxu1 %v1206_v22  ;;  %v1208_v39 = vld [vmem:[%s1419_s17 + $0x70] ss:$8 sps:$4 sm:$0xff]   ;;  %v1209_v40 = vld [vmem:[%s1419_s17 + $0x64] ss:$8 sps:$4 sm:$0xff]   ;;  %v1211_v41 = vld [vmem:[%s1419_s17 + $0x60] ss:$8 sps:$4 sm:$0xff]   ;;  %s393_s8 = scalar_lea.vmem %s1650_s2, %s1662_s30 }
  0x27   : > { %592 = vmatpush1.bf16.msra.mxu0 %v1208_v39  ;;  %1156 = vmatpush1.bf16.msra.mxu1 %v1208_v39  ;;  %v1212_v42 = vld [vmem:[%s1419_s17 + $0x54] ss:$8 sps:$4 sm:$0xff]   ;;  %v1214_v43 = vld [vmem:[%s1419_s17 + $0x50] ss:$8 sps:$4 sm:$0xff]   ;;  %v1215_v44 = vld [vmem:[%s1419_s17 + $0x44] ss:$8 sps:$4 sm:$0xff]  }
  0x28   : > { %418 = vadd.xlane.f32.xlu0 %v1141_v18  ;;  %422 = vadd.xlane.f32.xlu1 %v1145_v19  ;;  %v1217_v45 = vld [vmem:[%s1419_s17 + $0x40] ss:$8 sps:$4 sm:$0xff]   ;;  %v1218_v46 = vld [vmem:[%s1419_s17 + $0x34] ss:$8 sps:$4 sm:$0xff]   ;;  %v1220_v47 = vld [vmem:[%s1419_s17 + $0x30] ss:$8 sps:$4 sm:$0xff]  }
  0x29   : > { %593 = vmatprep.subr.bf16.mxu0 %v1209_v40  ;;  %1149 = vmatprep.subr.bf16.mxu1 %v1209_v40  ;;  %v1221_v48 = vld [vmem:[%s1419_s17 + $0x24] ss:$8 sps:$4 sm:$0xff]   ;;  %v1223_v50 = vld [vmem:[%s1419_s17 + $0x20] ss:$8 sps:$4 sm:$0xff]   ;;  %v1224_v51 = vld [vmem:[%s1419_s17 + $0x14] ss:$8 sps:$4 sm:$0xff]  }
  0x2a   : > { %623 = vmatprep.mubr.bf16.mxu0 %v1310_v49  ;;  %633 = vmatprep.mubr.bf16.mxu1 %v1310_v49  ;;  %v1226_v52 = vld [vmem:[%s1419_s17 + $0x10] ss:$8 sps:$4 sm:$0xff]   ;;  %v1227_v53 = vld [vmem:[%s1419_s17 + $0x4] ss:$8 sps:$4 sm:$0xff]   ;;  %v1229_v54 = vld [vmem:[%s1419_s17] ss:$8 sps:$4 sm:$0xff]  }
  0x2b   : > { %594 = vmatpush1.bf16.msra.mxu0 %v1211_v41  ;;  %1157 = vmatpush1.bf16.msra.mxu1 %v1211_v41  ;;  %v1106_v5 = vld [vmem:[%s1651_s3] ss:$0 sm:$0xff]  ;;  %s1138_s10 = sshll.u32 (%p1377_p6), %s1300_s20, 3 }
  0x2c   : > { %420 = vadd.xlane.f32.xlu0 %v1142_v20  ;;  %424 = vadd.xlane.f32.xlu1 %v1146_v21  ;;  %v1107_v10 = vld [vmem:[%s1652_s4] ss:$0 sm:$0xff]  ;;  %s947_s13 = scalar_lea.vmem (%p1377_p6), %s1653_s5, %s1138_s10 }
  0x2d   : > { %595 = vmatprep.subr.bf16.mxu0 %v1212_v42  ;;  %1150 = vmatprep.subr.bf16.mxu1 %v1212_v42 }
  0x2f   : > { %596 = vmatpush1.bf16.msra.mxu0 %v1214_v43  ;;  %1158 = vmatpush1.bf16.msra.mxu1 %v1214_v43 }
  0x30   : > { %597 = vmatprep.subr.bf16.mxu0 %v1215_v44  ;;  %1151 = vmatprep.subr.bf16.mxu1 %v1215_v44 }
  0x33   : > { %598 = vmatpush1.bf16.msra.mxu0 %v1217_v45  ;;  %1159 = vmatpush1.bf16.msra.mxu1 %v1217_v45 }
  0x34   : > { %599 = vmatprep.subr.bf16.mxu0 %v1218_v46  ;;  %1152 = vmatprep.subr.bf16.mxu1 %v1218_v46 }
  0x37   : > { %600 = vmatpush1.bf16.msra.mxu0 %v1220_v47  ;;  %1160 = vmatpush1.bf16.msra.mxu1 %v1220_v47 }
  0x38   : > { %601 = vmatprep.subr.bf16.mxu0 %v1221_v48  ;;  %1153 = vmatprep.subr.bf16.mxu1 %v1221_v48 }
  0x3b   : > { %602 = vmatpush1.bf16.msra.mxu0 %v1223_v50  ;;  %1161 = vmatpush1.bf16.msra.mxu1 %v1223_v50 }
  0x3c   : > { %603 = vmatprep.subr.bf16.mxu0 %v1224_v51  ;;  %1154 = vmatprep.subr.bf16.mxu1 %v1224_v51 }
  0x3f   : > { %604 = vmatpush1.bf16.msra.mxu0 %v1226_v52  ;;  %1162 = vmatpush1.bf16.msra.mxu1 %v1226_v52 }
  0x40   : > { %605 = vmatprep.subr.bf16.mxu0 %v1227_v53  ;;  %1155 = vmatprep.subr.bf16.mxu1 %v1227_v53 }
  0x43   : > { %606 = vmatpush1.bf16.msra.mxu0 %v1229_v54  ;;  %1163 = vmatpush1.bf16.msra.mxu1 %v1229_v54 }
  0xb1   : > { %v419_v23 = vpop.xlane.xlu0 %418  ;;  %v423_v24 = vpop.xlane.xlu1 %422 }
  0xb2   : > { %v427_v25 = vmul.f32 0.0078125, %v419_v23  ;;  %v429_v26 = vmul.f32 0.0078125, %v423_v24  ;;  %v673_v23 = vlaneseq }
  0xb4   : > { %v1422_v27 = vsub.f32 %v1141_v18, %v427_v25  ;;  %v1424_v28 = vsub.f32 %v1145_v19, %v429_v26  ;;  %v674_v24 = vshrl.u32 %v673_v23, 7  ;;  %v671_v26 = vld [vmem:[%s393_s8] sm:$0x3] }
  0xb5   : > { %v421_v29 = vpop.xlane.xlu0 %420  ;;  %v425_v30 = vpop.xlane.xlu1 %424 }
  0xb6   : > { %v428_v31 = vmul.f32 0.0078125, %v421_v29  ;;  %v435_v32 = vmul.f32 %v1422_v27, %v1422_v27  ;;  %v430_v33 = vmul.f32 0.0078125, %v425_v30  ;;  %v437_v36 = vmul.f32 %v1424_v28, %v1424_v28 }
  0xb7   : > { %v675_v25 = vsub.s32 0, %v674_v24 }
  0xb8   : > { %v1428_v34 = vsub.f32 %v1142_v20, %v428_v31  ;;  %439 = vadd.xlane.f32.xlu0 %v435_v32  ;;  %v1430_v35 = vsub.f32 %v1146_v21, %v430_v33 }
  0xba   : > { %v436_v37 = vmul.f32 %v1428_v34, %v1428_v34  ;;  %v438_v38 = vmul.f32 %v1430_v35, %v1430_v35 }
  0xbc   : > { %443 = vadd.xlane.f32.xlu0 %v437_v36  ;;  %441 = vadd.xlane.f32.xlu1 %v436_v37 }
  0xc0   : > { %445 = vadd.xlane.f32.xlu1 %v438_v38 }
 0x141   : > { %v440_v55 = vpop.xlane.xlu0 %439 }
 0x142   : > { %v447_v56 = vmul.f32 0.0078125, %v440_v55 }
 0x144   : > { %v451_v57 = vadd.f32 1.1920929e-07, %v447_v56 }
 0x145   : > { %v442_v58 = vpop.xlane.xlu1 %441  ;;  %v444_v59 = vpop.xlane.xlu0 %443 }
 0x146   : > { %1230 = vrsqrt.f32 %v451_v57  ;;  %v448_v60 = vmul.f32 0.0078125, %v442_v58  ;;  %v449_v61 = vmul.f32 0.0078125, %v444_v59 }
 0x148   : > { %v452_v62 = vadd.f32 1.1920929e-07, %v448_v60  ;;  %v453_v63 = vadd.f32 1.1920929e-07, %v449_v61 }
 0x149   : > { %v446_v0 = vpop.xlane.xlu1 %445 }
 0x14a   : > { %1232 = vrsqrt.f32 %v452_v62  ;;  %v450_v1 = vmul.f32 0.0078125, %v446_v0 }
 0x14b   : > { %1234 = vrsqrt.f32 %v453_v63 }
 0x14c   : > { %v454_v2 = vadd.f32 1.1920929e-07, %v450_v1 }
 0x14e   : > { %1236 = vrsqrt.f32 %v454_v2 }
 0x153   : > { %v1231_v3 = vpop.eup %1230 }
 0x154   : > { %v459_v4 = vmul.f32 %v1231_v3, %v1422_v27  ;;  %v679_v27 = vsub.s32 1, %v674_v24 }
 0x156   : > { %v470_v9 = vmul.f32 %v1106_v5, %v459_v4  ;;  %v680_v29 = vrot.slane %v671_v26, %v679_v27 }
 0x157   : > { %v1233_v6 = vpop.eup %1232 }
 0x158   : > { %v1235_v7 = vpop.eup %1234  ;;  %v460_v8 = vmul.f32 %v1233_v6, %v1428_v34  ;;  %v481_v14 = vadd.f32 %v1107_v10, %v470_v9 }
 0x159   : > { %v461_v11 = vmul.f32 %v1235_v7, %v1424_v28  ;;  %v676_v28 = vrot.slane %v671_v26, %v675_v25  ;;  %v1311_v25 = vmov -1.0  }
 0x15a   : > { %v471_v12 = vmul.f32 %v1106_v5, %v460_v8 }
 0x15b   : > { %v1237_v13 = vpop.eup %1236  ;;  %v472_v17 = vmul.f32 %v1106_v5, %v461_v11 }
 0x15c   : > { %v482_v15 = vadd.f32 %v1107_v10, %v471_v12  ;;  %v462_v16 = vmul.f32 %v1237_v13, %v1430_v35 }
 0x15d   : > { %v483_v20 = vadd.f32 %v1107_v10, %v472_v17 }
 0x15e   : > { %v485_v18 = vpack.c.bf16 %v482_v15, %v481_v14  ;;  %v473_v19 = vmul.f32 %v1106_v5, %v462_v16 }
 0x160   : > { %624 = vmatmul.mubr.bf16.vlgmr.msra.gmra.mxu0 %v485_v18  ;;  %v484_v21 = vadd.f32 %v1107_v10, %v473_v19 }
 0x162   : > { %v486_v22 = vpack.c.bf16 %v484_v21, %v483_v20 }
 0x164   : > { %634 = vmatmul.mubr.bf16.vlgmr.msra.gmra.mxu1 %v486_v22 }
 0x220   : > { %v625_v30 = vpop.f32.mrf.mxu0 }
 0x221   : > { %v683_v31 = vadd.f32 %v676_v28, %v625_v30 }
 0x222   : > { %v627_v32 = vpop.f32.mrf.mxu0 }
 0x223   : > { %v1467_v33 = vmul.f32 0.70710677, %v683_v31  ;;  %v684_v34 = vadd.f32 %v680_v29, %v627_v32  ;;  %v1503_v11 = vmul.f32 0.5, %v683_v31 }
 0x224   : > { %v629_v35 = vpop.f32.mrf.mxu0  ;;  %v635_v36 = vpop.f32.mrf.mxu1 }
 0x225   : > { %v723_v37 = vand.u32 2147483647, %v1467_v33  ;;  %v1470_v38 = vmul.f32 0.70710677, %v684_v34  ;;  %v1472_v39 = vadd.f32 %v676_v28, %v629_v35  ;;  %v1474_v40 = vadd.f32 %v676_v28, %v635_v36 }
 0x226   : > { %v631_v44 = vpop.f32.mrf.mxu0  ;;  %v637_v47 = vpop.f32.mrf.mxu1  ;;  %vm707_vm0 = vcmp.ge.f32.partialorder %v1467_v33, 0.0  ;;  %v1511_v19 = vmul.f32 0.5, %v684_v34 }
 0x227   : > { %v731_v41 = vmul.f32 0.3275911, %v723_v37  ;;  %v724_v42 = vand.u32 2147483647, %v1470_v38  ;;  %v1478_v43 = vmul.f32 0.70710677, %v1472_v39  ;;  %v1484_v51 = vadd.f32 %v680_v29, %v631_v44 }
 0x228   : > { %v1482_v49 = vmul.f32 0.70710677, %v1474_v40  ;;  %v639_v54 = vpop.f32.mrf.mxu1  ;;  %v835_v58 = vsub.f32 0.0, %v723_v37  ;;  %v1490_v59 = vadd.f32 %v680_v29, %v637_v47  ;;  %vm708_vm1 = vcmp.ge.f32.partialorder %v1470_v38, 0.0 }
 0x229   : > { %v739_v45 = vadd.f32 1.0, %v731_v41  ;;  %v732_v46 = vmul.f32 0.3275911, %v724_v42  ;;  %v725_v48 = vand.u32 2147483647, %v1478_v43  ;;  %v1492_v60 = vadd.f32 %v676_v28, %v639_v54 }
 0x22a   : > { %v727_v53 = vand.u32 2147483647, %v1482_v49  ;;  %v1488_v57 = vmul.f32 0.70710677, %v1484_v51  ;;  %v836_v63 = vsub.f32 0.0, %v724_v42  ;;  %v843_v2 = vmul.f32 %v835_v58, %v723_v37  ;;  %v641_v5 = vpop.f32.mrf.mxu1 }
 0x22b   : > { %1238 = vrcp.f32 %v739_v45  ;;  %v740_v50 = vadd.f32 1.0, %v732_v46  ;;  %v733_v52 = vmul.f32 0.3275911, %v725_v48  ;;  %v1496_v0 = vmul.f32 0.70710677, %v1490_v59 }
 0x22c   : > { %v735_v56 = vmul.f32 0.3275911, %v727_v53  ;;  %v726_v62 = vand.u32 2147483647, %v1488_v57  ;;  %v1500_v4 = vmul.f32 0.70710677, %v1492_v60  ;;  %v844_v7 = vmul.f32 %v836_v63, %v724_v42 }
 0x22d   : > { %1240 = vrcp.f32 %v740_v50  ;;  %v741_v55 = vadd.f32 1.0, %v733_v52  ;;  %v728_v3 = vand.u32 2147483647, %v1496_v0  ;;  %v837_v8 = vsub.f32 0.0, %v725_v48 }
 0x22e   : > { %v743_v61 = vadd.f32 1.0, %v735_v56  ;;  %v734_v1 = vmul.f32 0.3275911, %v726_v62  ;;  %v729_v10 = vand.u32 2147483647, %v1500_v4  ;;  %v1506_v12 = vadd.f32 %v680_v29, %v641_v5 }
 0x22f   : > { %1242 = vrcp.f32 %v741_v55  ;;  %v736_v9 = vmul.f32 0.3275911, %v728_v3  ;;  %v851_v14 = vmul.f32 1.442695, %v843_v2  ;;  %v839_v15 = vsub.f32 0.0, %v727_v53 }
 0x230   : > { %1244 = vrcp.f32 %v743_v61  ;;  %v742_v6 = vadd.f32 1.0, %v734_v1  ;;  %v737_v17 = vmul.f32 0.3275911, %v729_v10  ;;  %v1515_v20 = vmul.f32 0.70710677, %v1506_v12 }
 0x231   : > { %v744_v16 = vadd.f32 1.0, %v736_v9  ;;  %v853_v21 = vmul.f32 1.442695, %v844_v7  ;;  %v845_v22 = vmul.f32 %v837_v8, %v725_v48  ;;  %v1522_v26 = vsel %vm707_vm0, 1.0, %v1311_v25 }
 0x232   : > { %1246 = vrcp.f32 %v742_v6  ;;  %v745_v23 = vadd.f32 1.0, %v737_v17  ;;  %v838_v28 = vsub.f32 0.0, %v726_v62  ;;  %v1525_v29 = vand.u32 2147483647, %v1515_v20 }
 0x233   : > { %1248 = vrcp.f32 %v744_v16  ;;  %v1528_v30 = vsel %vm708_vm1, 1.0, %v1311_v25  ;;  %v847_v32 = vmul.f32 %v839_v15, %v727_v53  ;;  %v840_v36 = vsub.f32 0.0, %v728_v3 }
 0x234   : > { %1250 = vpow2.f32 %v851_v14  ;;  %v738_v33 = vmul.f32 0.3275911, %v1525_v29  ;;  %v855_v41 = vmul.f32 1.442695, %v845_v22  ;;  %v846_v44 = vmul.f32 %v838_v28, %v726_v62 }
 0x235   : > { %1252 = vrcp.f32 %v745_v23  ;;  %v859_v50 = vmul.f32 1.442695, %v847_v32  ;;  %v841_v52 = vsub.f32 0.0, %v729_v10  ;;  %v848_v55 = vmul.f32 %v840_v36, %v728_v3 }
 0x236   : > { %1254 = vpow2.f32 %v853_v21  ;;  %v746_v45 = vadd.f32 1.0, %v738_v33  ;;  %vm709_vm2 = vcmp.ge.f32.partialorder %v1478_v43, 0.0  ;;  %v857_v63 = vmul.f32 1.442695, %v846_v44 }
 0x237   : > { %v849_v6 = vmul.f32 %v841_v52, %v729_v10  ;;  %v861_v9 = vmul.f32 1.442695, %v848_v55  ;;  %v1552_v15 = vsel %vm709_vm2, 1.0, %v1311_v25  ;;  %v842_v17 = vsub.f32 0.0, %v1525_v29 }
 0x238   : > { %v1508_v13 = vpop.eup %1238  ;;  %1256 = vrcp.f32 %v746_v45  ;;  %vm711_vm3 = vcmp.ge.f32.partialorder %v1482_v49, 0.0  ;;  %vm710_vm4 = vcmp.ge.f32.partialorder %v1488_v57, 0.0  ;;  %vm712_vm5 = vcmp.ge.f32.partialorder %v1496_v0, 0.0 }
 0x239   : > { %v763_v18 = vmul.f32 1.0614054, %v1508_v13  ;;  %1258 = vpow2.f32 %v855_v41  ;;  %vm713_vm6 = vcmp.ge.f32.partialorder %v1500_v4, 0.0  ;;  %vm714_vm7 = vcmp.ge.f32.partialorder %v1515_v20, 0.0 }
 0x23a   : > { %v1517_v24 = vpop.eup %1240  ;;  %1260 = vpow2.f32 %v859_v50 }
 0x23b   : > { %v771_v27 = vadd.f32 -1.4531521, %v763_v18  ;;  %v764_v31 = vmul.f32 1.0614054, %v1517_v24  ;;  %1262 = vpow2.f32 %v857_v63 }
 0x23c   : > { %v1531_v34 = vpop.eup %1242  ;;  %1264 = vpow2.f32 %v861_v9 }
 0x23d   : > { %v779_v35 = vmul.f32 %v1508_v13, %v771_v27  ;;  %v772_v37 = vadd.f32 -1.4531521, %v764_v31  ;;  %v765_v38 = vmul.f32 1.0614054, %v1531_v34  ;;  %v1536_v46 = vpop.eup %1244  ;;  %v863_v31 = vmul.f32 1.442695, %v849_v6 }
 0x23e   : > { %v767_v54 = vmul.f32 1.0614054, %v1536_v46 }
 0x23f   : > { %v787_v42 = vadd.f32 1.4214138, %v779_v35  ;;  %v780_v47 = vmul.f32 %v1517_v24, %v772_v37  ;;  %v773_v48 = vadd.f32 -1.4531521, %v765_v38  ;;  %v1543_v1 = vpop.eup %1246  ;;  %1266 = vpow2.f32 %v863_v31 }
 0x240   : > { %v775_v62 = vadd.f32 -1.4531521, %v767_v54  ;;  %v766_v8 = vmul.f32 1.0614054, %v1543_v1  ;;  %v1556_v18 = vpop.eup %1248 }
 0x241   : > { %v795_v53 = vmul.f32 %v1508_v13, %v787_v42  ;;  %v788_v56 = vadd.f32 1.4214138, %v780_v47  ;;  %v781_v58 = vmul.f32 %v1531_v34, %v773_v48  ;;  %v768_v28 = vmul.f32 1.0614054, %v1556_v18  ;;  %v1251_v32 = vpop.eup %1250 }
 0x242   : > { %v783_v3 = vmul.f32 %v1536_v46, %v775_v62  ;;  %v774_v22 = vadd.f32 -1.4531521, %v766_v8  ;;  %v1563_v33 = vpop.eup %1252  ;;  %v850_v42 = vmul.f32 %v842_v17, %v1525_v29 }
 0x243   : > { %v803_v61 = vadd.f32 -0.28449672, %v795_v53  ;;  %v796_v2 = vmul.f32 %v1517_v24, %v788_v56  ;;  %v789_v5 = vadd.f32 1.4214138, %v781_v58  ;;  %v776_v41 = vadd.f32 -1.4531521, %v768_v28  ;;  %v1255_v50 = vpop.eup %1254 }
 0x244   : > { %v791_v21 = vadd.f32 1.4214138, %v783_v3  ;;  %v782_v36 = vmul.f32 %v1543_v1, %v774_v22  ;;  %v769_v48 = vmul.f32 1.0614054, %v1563_v33 }
 0x245   : > { %v811_v7 = vmul.f32 %v1508_v13, %v803_v61  ;;  %v804_v14 = vadd.f32 -0.28449672, %v796_v2  ;;  %v797_v16 = vmul.f32 %v1531_v34, %v789_v5  ;;  %v784_v53 = vmul.f32 %v1556_v18, %v776_v41  ;;  %v1572_v61 = vpop.eup %1256 }
 0x246   : > { %v799_v35 = vmul.f32 %v1536_v46, %v791_v21  ;;  %v790_v47 = vadd.f32 1.4214138, %v782_v36  ;;  %v777_v58 = vadd.f32 -1.4531521, %v769_v48  ;;  %v865_v2 = vmul.f32 1.442695, %v850_v42  ;;  %v1259_v5 = vpop.eup %1258 }
 0x247   : > { %v819_v10 = vadd.f32 0.2548296, %v811_v7  ;;  %v812_v23 = vmul.f32 %v1517_v24, %v804_v14  ;;  %v805_v27 = vadd.f32 -0.28449672, %v797_v16  ;;  %v792_v63 = vadd.f32 1.4214138, %v784_v53  ;;  %v1261_v17 = vpop.eup %1260 }
 0x248   : > { %v807_v45 = vadd.f32 -0.28449672, %v799_v35  ;;  %v798_v56 = vmul.f32 %v1543_v1, %v790_v47  ;;  %v785_v3 = vmul.f32 %v1563_v33, %v777_v58  ;;  %v770_v16 = vmul.f32 1.0614054, %v1572_v61  ;;  %v1263_v35 = vpop.eup %1262 }
 0x249   : > { %v827_v43 = vmul.f32 %v1508_v13, %v819_v10  ;;  %v820_v37 = vadd.f32 0.2548296, %v812_v23  ;;  %v813_v38 = vmul.f32 %v1531_v34, %v805_v27  ;;  %v800_v14 = vmul.f32 %v1556_v18, %v792_v63  ;;  %v1265_v42 = vpop.eup %1264 }
 0x24a   : > { %v815_v55 = vmul.f32 %v1536_v46, %v807_v45  ;;  %v806_v7 = vadd.f32 -0.28449672, %v798_v56  ;;  %v793_v22 = vadd.f32 1.4214138, %v785_v3  ;;  %v778_v27 = vadd.f32 -1.4531521, %v770_v16 }
 0x24b   : > { %v867_v44 = vmul.f32 %v1251_v32, %v827_v43  ;;  %v828_v13 = vmul.f32 %v1517_v24, %v820_v37  ;;  %v821_v52 = vadd.f32 0.2548296, %v813_v38  ;;  %v808_v23 = vadd.f32 -0.28449672, %v800_v14 }
 0x24c   : > { %v823_v6 = vadd.f32 0.2548296, %v815_v55  ;;  %v814_v21 = vmul.f32 %v1543_v1, %v806_v7  ;;  %v801_v43 = vmul.f32 %v1563_v33, %v793_v22  ;;  %v786_v37 = vmul.f32 %v1572_v61, %v778_v27  ;;  %v1267_v55 = vpop.eup %1266 }
 0x24d   : > { %v875_v54 = vsub.f32 1.0, %v867_v44  ;;  %v868_v29 = vmul.f32 %v1255_v50, %v828_v13  ;;  %v829_v62 = vmul.f32 %v1531_v34, %v821_v52  ;;  %1268 = vpow2.f32 %v865_v2 }
 0x24e   : > { %v831_v34 = vmul.f32 %v1536_v46, %v823_v6  ;;  %v822_v32 = vadd.f32 0.2548296, %v814_v21  ;;  %v816_v46 = vmul.f32 %v1556_v18, %v808_v23  ;;  %v809_v41 = vadd.f32 -0.28449672, %v801_v43 }
 0x24f   : > { %v883_v24 = vmul.f32 %v875_v54, %v1522_v26  ;;  %v876_v8 = vsub.f32 1.0, %v868_v29  ;;  %v869_v9 = vmul.f32 %v1259_v5, %v829_v62  ;;  %v794_v48 = vadd.f32 1.4214138, %v786_v37 }
 0x250   : > { %v871_v31 = vmul.f32 %v1261_v17, %v831_v34  ;;  %v830_v38 = vmul.f32 %v1543_v1, %v822_v32  ;;  %v824_v47 = vadd.f32 0.2548296, %v816_v46  ;;  %v817_v52 = vmul.f32 %v1563_v33, %v809_v41 }
 0x251   : > { %v891_v10 = vadd.f32 1.0, %v883_v24  ;;  %v884_v26 = vmul.f32 %v876_v8, %v1528_v30  ;;  %v877_v28 = vsub.f32 1.0, %v869_v9  ;;  %v719_v1 = vsel %vm711_vm3, 1.0, %v1311_v25 }
 0x252   : > { %v879_v45 = vsub.f32 1.0, %v871_v31  ;;  %v870_v13 = vmul.f32 %v1263_v35, %v830_v38  ;;  %v832_v54 = vmul.f32 %v1556_v18, %v824_v47  ;;  %v825_v58 = vadd.f32 0.2548296, %v817_v52 }
 0x253   : > { %v892_v36 = vadd.f32 1.0, %v884_v26  ;;  %v899_v30 = vmul.f32 %v891_v10, %v1503_v11  ;;  %v885_v50 = vmul.f32 %v877_v28, %v1552_v15  ;;  %v802_v11 = vmul.f32 %v1572_v61, %v794_v48 }
 0x254   : > { %v878_v56 = vsub.f32 1.0, %v870_v13  ;;  %v887_v15 = vmul.f32 %v879_v45, %v719_v1  ;;  %v872_v18 = vmul.f32 %v1265_v42, %v832_v54  ;;  %v833_v49 = vmul.f32 %v1563_v33, %v825_v58 }
 0x255   : > { %v900_v44 = vmul.f32 %v892_v36, %v1511_v19  ;;  %v718_v19 = vsel %vm710_vm4, 1.0, %v1311_v25  ;;  %v810_v29 = vadd.f32 -0.28449672, %v802_v11  ;;  %v893_v62 = vadd.f32 1.0, %v885_v50 }
 0x256   : > { %v886_v63 = vmul.f32 %v878_v56, %v718_v19  ;;  %v693_v2 = vmul.f32 0.5, %v1472_v39  ;;  %v880_v5 = vsub.f32 1.0, %v872_v18  ;;  %v694_v24 = vmul.f32 0.5, %v1484_v51 }
 0x257   : > { %v1134_v53 = vpack.c.bf16 %v900_v44, %v899_v30  ;;  %v818_v57 = vmul.f32 %v1572_v61, %v810_v29  ;;  %v720_v7 = vsel %vm712_vm5, 1.0, %v1311_v25  ;;  %v873_v3 = vmul.f32 %v1267_v55, %v833_v49 }
 0x258   : > { %v894_v6 = vadd.f32 1.0, %v886_v63  ;;  %v895_v8 = vadd.f32 1.0, %v887_v15  ;;  %v888_v9 = vmul.f32 %v880_v5, %v720_v7  ;;  %v901_v14 = vmul.f32 %v893_v62, %v693_v2 }
 0x259   : > { %931 = vst [vmem:[%s1602_s18] sm:$0xff] %v1134_v53  ;;  %v826_v0 = vadd.f32 0.2548296, %v818_v57  ;;  %v881_v33 = vsub.f32 1.0, %v873_v3  ;;  %v695_v39 = vmul.f32 0.5, %v1474_v40  ;;  %v696_v17 = vmul.f32 0.5, %v1490_v59 }
 0x25a   : > { %v902_v16 = vmul.f32 %v894_v6, %v694_v24  ;;  %v896_v10 = vadd.f32 1.0, %v888_v9  ;;  %v1269_v34 = vpop.eup %1268  ;;  %v721_v22 = vsel %vm713_vm6, 1.0, %v1311_v25  ;;  %v722_v31 = vsel %vm714_vm7, 1.0, %v1311_v25 }
 0x25b   : > { %v834_v51 = vmul.f32 %v1572_v61, %v826_v0  ;;  %v903_v4 = vmul.f32 %v895_v8, %v695_v39  ;;  %v889_v23 = vmul.f32 %v881_v33, %v721_v22  ;;  %v697_v61 = vmul.f32 0.5, %v1492_v60 }
 0x25c   : > { %v1135_v21 = vpack.c.bf16 %v902_v16, %v901_v14  ;;  %v904_v26 = vmul.f32 %v896_v10, %v696_v17  ;;  %v698_v43 = vmul.f32 0.5, %v1506_v12 }
 0x25d   : > { %v874_v27 = vmul.f32 %v1269_v34, %v834_v51  ;;  %v897_v59 = vadd.f32 1.0, %v889_v23 }
 0x25e   : > { %932 = vst [vmem:[%s1602_s18 + $0x8] sm:$0xff] %v1135_v21  ;;  %v1136_v28 = vpack.c.bf16 %v904_v26, %v903_v4 }
 0x25f   : > { %v882_v40 = vsub.f32 1.0, %v874_v27  ;;  %v905_v36 = vmul.f32 %v897_v59, %v697_v61 }
 0x260   : > { %933 = vst [vmem:[%s1602_s18 + $0x10] sm:$0xff] %v1136_v28  ;;  %v982_v25 = vld [vmem:[%s1602_s18] sm:$0xff] (%p1377_p6) }
 0x261   : > { %v890_v32 = vmul.f32 %v882_v40, %v722_v31  ;;  %983 = vst [vmem:[%s947_s13] sm:$0xff] (%p1377_p6), %v982_v25 }
 0x263   : > { %v898_v35 = vadd.f32 1.0, %v890_v32 }
 0x265   : > { %v906_v20 = vmul.f32 %v898_v35, %v698_v43  ;;  %941 = sbr.rel (!%p1377_p6) target bundleno = 626 (0x272), region = 90  ;;  %v984_v37 = vld [vmem:[%s1602_s18 + $0x8] sm:$0xff] (%p1377_p6) }
 0x266   : > { %985 = vst [vmem:[%s947_s13 + $0x10] sm:$0xff] (%p1377_p6), %v984_v37 }
 0x267   : > { %v1137_v46 = vpack.c.bf16 %v906_v20, %v905_v36  ;;  %v986_v30 = vld [vmem:[%s1602_s18 + $0x10] sm:$0xff] (%p1377_p6) }
 0x268   : > { %987 = vst [vmem:[%s947_s13 + $0x20] sm:$0xff] (%p1377_p6), %v986_v30 }
 0x269   : > { %934 = vst [vmem:[%s1602_s18 + $0x18] sm:$0xff] %v1137_v46 }
 0x270   : > { %v988_v60 = vld [vmem:[%s1602_s18 + $0x18] sm:$0xff] }
 0x271   : > { %989 = vst [vmem:[%s947_s13 + $0x30] sm:$0xff] %v988_v60 }
 0x272 PF: > { %s15_s22 = sadd.s32 1, %s1308_s22   ;;  %s1655_s18 = smov %s1296_s19 }
 0x273   : > { %p12_p12 = scmp.ge.s32.totalorder %s15_s22, 4   ;;  %s1656_s19 = smov %s1382_s28 }
 0x274   : > { %s1657_s20 = smov %s1304_s21  ;;  %s1658_s21 = smov %s1660_s23 }
 0x275   :  { %14 = sbr.rel (!%p12_p12) target bundleno = 3 (0x3), region = 165 }

</bundles_post_ra>
